<compile_context>
chip_gen: v7x
topology: tpu7x:2x2x1
jax: 0.10.0
libtpu: 0.0.40
codegen_flags: <defaults>
</compile_context>

<pallas_src>
import functools

import jax
import jax.numpy as jnp
from jax.experimental import pallas as pl
from jax.experimental.pallas import tpu as pltpu


# ----------------------------------------------------------------------------
# Kernel
# ----------------------------------------------------------------------------
def goalnet_kernel(x_ref, h0_ref, c0_ref, wih_ref, whh_ref, b_ref, wfc_ref,
                   bfc_ref, y_ref, hn_ref, cn_ref,
                   gx_scr, hs_scr, h_scr, c_scr,
                   *, seq_len, needs_tail_mask):
    """One grid step = (batch block bb, time chunk) of tT timesteps.

    x_ref   : (tT, Bb, Ip) f32   time-major, padded input chunk
    h0/c0   : (Bb, Hp)     f32   initial state (consumed at time step 0 only)
    wih_ref : (Ip, 4Hp)    bf16  W_ih^T  (PyTorch gate order i,f,g,o; each gate
                                 padded to Hp lanes -> 128-aligned slices)
    whh_ref : (Hp, 4Hp)    bf16  W_hh^T
    b_ref   : (1, 4Hp)     f32   b_ih + b_hh
    wfc_ref : (Hp, Op)     bf16  W_fc^T
    bfc_ref : (1, Op)      f32   b_fc
    y_ref   : (tT, Bb, Op)       chunk output (Linear(h_t))
    hn/cn   : (Bb, Hp)     f32   final hidden / cell state
    gx_scr  : (tT, Bb, 4Hp) f32  precomputed input-projection gates
    hs_scr  : (tT, Bb, Hp)  f32  per-step hidden states for the chunk
    h_scr/c_scr : (Bb, Hp)  f32  recurrent state carried across time chunks
    """
    tT, Bb, Ip = x_ref.shape
    Hp = h_scr.shape[1]
    G = 4 * Hp
    t_axis = 1  # grid = (batch_block, time_chunk)

    @pl.when(pl.program_id(t_axis) == 0)
    def _init():
        h_scr[...] = h0_ref[...]
        c_scr[...] = c0_ref[...]

    # --- Input projection for the whole chunk: ONE bf16 MXU matmul ---------
    x_chunk = x_ref[...].reshape(tT * Bb, Ip).astype(jnp.bfloat16)
    gx = jnp.dot(x_chunk, wih_ref[...],
                 preferred_element_type=jnp.float32) + b_ref[...]
    gx_scr[...] = gx.reshape(tT, Bb, G)

    # Hoist loop-invariant reads out of the serial loop.
    whh = whh_ref[...]                                   # (Hp, 4Hp) bf16
    chunk_base = pl.program_id(t_axis) * tT

    def sigmoid(v):  # one EUP tanh instead of exp + divide
        return 0.5 * jnp.tanh(0.5 * v) + 0.5

    def step(t, carry):
        h, c = carry                                     # f32 vreg carry
        gates = gx_scr[t] + jnp.dot(h.astype(jnp.bfloat16), whh,
                                    preferred_element_type=jnp.float32)
        # Hp is a multiple of 128 -> all gate slices are lane-block aligned.
        i_g = sigmoid(gates[:, 0:Hp])
        f_g = sigmoid(gates[:, Hp:2 * Hp])
        g_g = jnp.tanh(gates[:, 2 * Hp:3 * Hp])
        o_g = sigmoid(gates[:, 3 * Hp:4 * Hp])

        c_new = f_g * c + i_g * g_g
        h_new = o_g * jnp.tanh(c_new)

        if needs_tail_mask:
            valid = (chunk_base + t) < seq_len
            c_new = jnp.where(valid, c_new, c)
            h_new = jnp.where(valid, h_new, h)

        hs_scr[t] = h_new
        return (h_new, c_new)

    unroll = tT if tT <= 8 else 8
    h_fin, c_fin = jax.lax.fori_loop(
        0, tT, step, (h_scr[...], c_scr[...]), unroll=unroll)

    # Carry state across time chunks (single VMEM store per chunk).
    h_scr[...] = h_fin
    c_scr[...] = c_fin

    # --- Final Linear for the whole chunk: ONE bf16 matmul, lane-dense store -
    # (dropout is identity in eval mode, so fc(hidden) directly)
    hs = hs_scr[...].reshape(tT * Bb, Hp).astype(jnp.bfloat16)
    y = jnp.dot(hs, wfc_ref[...],
                preferred_element_type=jnp.float32) + bfc_ref[...]
    y_ref[...] = y.reshape(tT, Bb, y_ref.shape[2]).astype(y_ref.dtype)

    @pl.when(pl.program_id(t_axis) == pl.num_programs(t_axis) - 1)
    def _finalize():
        hn_ref[...] = h_fin
        cn_ref[...] = c_fin


# ----------------------------------------------------------------------------
# Wrapper helpers
# ----------------------------------------------------------------------------
def _round_up(n, m):
    return ((n + m - 1) // m) * m


def _pad_gate_rows(w, H, Hp):
    """(4H, ...) -> (4Hp, ...): each PyTorch gate block (i,f,g,o) is placed at
    row offset k*Hp and zero-padded to Hp rows."""
    parts = []
    pad_shape = (Hp - H,) + w.shape[1:]
    zeros = jnp.zeros(pad_shape, w.dtype)
    for k in range(4):
        parts.append(w[k * H:(k + 1) * H])
        if Hp > H:
            parts.append(zeros)
    return jnp.concatenate(parts, axis=0)


def _tpu_vmem_capacity_bytes():
    try:
        info = pltpu.get_tpu_info()
        cap = getattr(info, "vmem_capacity_bytes", None)
        if cap:
            return int(cap)
    except Exception:
        pass
    return 64 * 1024 * 1024          # v7x-safe fallback


def _plan_chunk(T, Bb, Ip, Hp, Op, x_itemsize, y_itemsize):
    """Largest time chunk whose VMEM footprint (double-buffered weight blocks +
    state blocks + per-chunk scratch) fits under ~3/4 of physical VMEM."""
    cap = _tpu_vmem_capacity_bytes()
    vmem_limit = min(cap * 3 // 4, cap - (8 << 20))
    weight_bytes = (Ip * 4 * Hp * 2          # W_ih^T  bf16
                    + Hp * 4 * Hp * 2        # W_hh^T  bf16
                    + 4 * Hp * 4             # bias    f32
                    + Hp * Op * 2            # W_fc^T  bf16
                    + Op * 4)                # b_fc    f32
    # h0/c0 inputs + hn/cn outputs (double-buffered) + h/c carry scratch.
    state_bytes = Bb * Hp * 4 * (2 * 2 + 2 * 2 + 2)
    fixed = 2 * weight_bytes + state_bytes   # weights default-double-buffered
    per_t = (2 * Bb * Ip * x_itemsize        # x chunk  (double-buffered)
             + 2 * Bb * Op * y_itemsize      # y chunk  (double-buffered)
             + Bb * 4 * Hp * 4               # gx scratch (f32)
             + Bb * Hp * 4)                  # hs scratch (f32)
    budget = vmem_limit - fixed - (2 << 20)
    tT = int(max(1, min(T, 512, budget // per_t)))
    return tT, int(vmem_limit)


# ----------------------------------------------------------------------------
# Wrapper
# ----------------------------------------------------------------------------
def goalnet_forward(x, params, hidden=None):
    """x: (B, T, input_size), batch_first like the PyTorch module.

    Returns (y, (h_n, c_n)) with y: (B, T, output_size),
    h_n/c_n: (1, B, hidden_size) -- matching nn.LSTM(batch_first=True).
    """
    B, T, I = x.shape
    H = params["w_hh"].shape[1]          # w_hh: (4H, H)
    O = params["w_fc"].shape[0]          # w_fc: (O, H)

    # Padded sizes: lane-aligned gates / lane-dense output / sublane batch.
    Ip = _round_up(I, 16)                # 16: bf16-packing friendly W_ih^T rows
    Hp = _round_up(H, 128)
    Op = _round_up(O, 128)

    # Batch blocking: >=2 blocks lets the "parallel" axis shard across the two
    # TensorCores on v7x (harmless on single-TC v5e/v6e).
    Bp = _round_up(B, 8)
    if Bp >= 16:
        Bp = _round_up(B, 16)
        n_bb, Bb = 2, Bp // 2
    else:
        n_bb, Bb = 1, Bp

    f32, bf16 = jnp.float32, jnp.bfloat16

    tT, vmem_limit = _plan_chunk(T, Bb, Ip, Hp, Op, 4,
                                 jnp.dtype(x.dtype).itemsize)
    n_chunks = (T + tT - 1) // tT
    Tp = n_chunks * tT
    needs_tail_mask = (Tp != T)

    # ---- pad + transpose input to time-major (Tp, Bp, Ip) ----
    # TODO(synk): for long sequences, consume y time-major downstream to avoid
    # this pad/transpose HBM round trip and the output transpose below.
    x_p = jnp.zeros((Bp, Tp, Ip), f32).at[:B, :T, :I].set(x.astype(f32))
    x_tm = jnp.transpose(x_p, (1, 0, 2))

    # ---- pad weights (zero padding preserves the original math) ----
    wih_p = _pad_ate = _pad_gate_rows(params["w_ih"].astype(f32), H, Hp)   # (4Hp, I)
    wih_p = jnp.zeros((4 * Hp, Ip), f32).at[:, :I].set(wih_p)              # (4Hp, Ip)
    whh_p = _pad_gate_rows(params["w_hh"].astype(f32), H, Hp)              # (4Hp, H)
    whh_p = jnp.zeros((4 * Hp, Hp), f32).at[:, :H].set(whh_p)              # (4Hp, Hp)
    b_p = _pad_gate_rows(
        (params["b_ih"] + params["b_hh"]).astype(f32)[:, None], H, Hp)[:, 0]
    wfc_p = jnp.zeros((Op, Hp), f32).at[:O, :H].set(params["w_fc"].astype(f32))
    bfc_p = jnp.zeros((Op,), f32).at[:O].set(params["b_fc"].astype(f32))

    wih_t = wih_p.T.astype(bf16)          # (Ip, 4Hp)  MXU operand
    whh_t = whh_p.T.astype(bf16)          # (Hp, 4Hp)
    b2d = b_p.reshape(1, 4 * Hp)          # (1, 4Hp)   f32
    wfc_t = wfc_p.T.astype(bf16)          # (Hp, Op)
    bfc2d = bfc_p.reshape(1, Op)          # (1, Op)    f32

    # ---- initial hidden state ----
    if hidden is None:
        h0 = jnp.zeros((Bp, Hp), f32)
        c0 = jnp.zeros((Bp, Hp), f32)
    else:
        h_in, c_in = hidden                       # (1, B, H) each
        h0 = jnp.zeros((Bp, Hp), f32).at[:B, :H].set(h_in[0].astype(f32))
        c0 = jnp.zeros((Bp, Hp), f32).at[:B, :H].set(c_in[0].astype(f32))

    kernel = functools.partial(goalnet_kernel, seq_len=T,
                               needs_tail_mask=needs_tail_mask)

    grid = (n_bb, n_chunks)
    const2d = lambda bb, t: (0, 0)
    batch2d = lambda bb, t: (bb, 0)
    chunk3d = lambda bb, t: (t, bb, 0)

    y_tm, h_n, c_n = pl.pallas_call(
        kernel,
        out_shape=(
            jax.ShapeDtypeStruct((Tp, Bp, Op), x.dtype),
            jax.ShapeDtypeStruct((Bp, Hp), f32),
            jax.ShapeDtypeStruct((Bp, Hp), f32),
        ),
        grid=grid,
        in_specs=[
            pl.BlockSpec((tT, Bb, Ip), chunk3d),     # x chunk
            pl.BlockSpec((Bb, Hp), batch2d),         # h0
            pl.BlockSpec((Bb, Hp), batch2d),         # c0
            pl.BlockSpec((Ip, 4 * Hp), const2d),     # W_ih^T
            pl.BlockSpec((Hp, 4 * Hp), const2d),     # W_hh^T
            pl.BlockSpec((1, 4 * Hp), const2d),      # bias
            pl.BlockSpec((Hp, Op), const2d),         # W_fc^T
            pl.BlockSpec((1, Op), const2d),          # b_fc
        ],
        out_specs=(
            pl.BlockSpec((tT, Bb, Op), chunk3d),     # y chunk
            pl.BlockSpec((Bb, Hp), batch2d),         # h_n
            pl.BlockSpec((Bb, Hp), batch2d),         # c_n
        ),
        scratch_shapes=[
            pltpu.VMEM((tT, Bb, 4 * Hp), jnp.float32),   # gates_x for the chunk
            pltpu.VMEM((tT, Bb, Hp), jnp.float32),       # per-step hidden states
            pltpu.VMEM((Bb, Hp), jnp.float32),           # h carry (across chunks)
            pltpu.VMEM((Bb, Hp), jnp.float32),           # c carry
        ],
        compiler_params=pltpu.CompilerParams(
            dimension_semantics=("parallel", "arbitrary"),  # batch || , time seq
            vmem_limit_bytes=vmem_limit,
        ),
    )(x_tm, h0, c0, wih_t, whh_t, b2d, wfc_t, bfc2d)

    y = jnp.transpose(y_tm, (1, 0, 2))[:B, :T, :O]       # (B, T, O)
    h_n = h_n[:B, :H][None, ...].astype(x.dtype)
    c_n = c_n[:B, :H][None, ...].astype(x.dtype)
    return y, (h_n, c_n)


# ----------------------------------------------------------------------------
# Params + pure-JAX reference
# ----------------------------------------------------------------------------
def init_params(key, input_size, hidden_size, output_size):
    """Deterministic init mimicking PyTorch's U(-1/sqrt(H), 1/sqrt(H))."""
    ks = jax.random.split(key, 6)
    bound = 1.0 / jnp.sqrt(jnp.float32(hidden_size))
    u = lambda k, shape: jax.random.uniform(
        k, shape, jnp.float32, minval=-bound, maxval=bound)
    return {
        "w_ih": u(ks[0], (4 * hidden_size, input_size)),
        "w_hh": u(ks[1], (4 * hidden_size, hidden_size)),
        "b_ih": u(ks[2], (4 * hidden_size,)),
        "b_hh": u(ks[3], (4 * hidden_size,)),
        "w_fc": u(ks[4], (output_size, hidden_size)),
        "b_fc": u(ks[5], (output_size,)),
    }


def goalnet_reference(x, params):
    """Pure-JAX reference (same math as torch.nn.LSTM + Linear, eval mode)."""
    B, T, I = x.shape
    H = params["w_hh"].shape[1]
    wih_t = params["w_ih"].T
    whh_t = params["w_hh"].T
    b = params["b_ih"] + params["b_hh"]

    def step(carry, x_t):
        h, c = carry
        gates = x_t @ wih_t + h @ whh_t + b
        i_g = jax.nn.sigmoid(gates[:, 0:H])
        f_g = jax.nn.sigmoid(gates[:, H:2 * H])
        g_g = jnp.tanh(gates[:, 2 * H:3 * H])
        o_g = jax.nn.sigmoid(gates[:, 3 * H:4 * H])
        c = f_g * c + i_g * g_g
        h = o_g * jnp.tanh(c)
        return (h, c), h

    h0 = jnp.zeros((B, H), jnp.float32)
    c0 = jnp.zeros((B, H), jnp.float32)
    (h_n, c_n), hs = jax.lax.scan(step, (h0, c0), jnp.transpose(x, (1, 0, 2)))
    hs = jnp.transpose(hs, (1, 0, 2))                     # (B, T, H)
    y = hs @ params["w_fc"].T + params["b_fc"]
    return y, (h_n[None], c_n[None])


if __name__ == "__main__":
    # Small shapes consistent with the module's forward.
    B, T = 2, 8
    input_size, hidden_size, output_size = 4, 32, 16

    key = jax.random.PRNGKey(0)
    k_x, k_p = jax.random.split(key)
    x = jax.random.normal(k_x, (B, T, input_size), jnp.float32)
    params = init_params(k_p, input_size, hidden_size, output_size)

    y, (h_n, c_n) = goalnet_forward(x, params)
    y = jax.block_until_ready(y)
    h_n = jax.block_until_ready(h_n)
    c_n = jax.block_until_ready(c_n)

    # Sanity-check against the pure-JAX f32 reference (bf16 MXU operands =>
    # slightly looser tolerance than the f32-everywhere version).
    y_ref, (h_ref, c_ref) = goalnet_reference(x, params)
    assert y.shape == (B, T, output_size)
    assert h_n.shape == (1, B, hidden_size) and c_n.shape == (1, B, hidden_size)
    assert jnp.allclose(y, y_ref, atol=3e-2, rtol=3e-2)
    assert jnp.allclose(h_n, h_ref, atol=3e-2, rtol=3e-2)
    assert jnp.allclose(c_n, c_ref, atol=3e-2, rtol=3e-2)

    print("KERNEL_OK")
</pallas_src>

<mosaic_0001>
module attributes {stable_mosaic.version = 11 : i64} {
  func.func @goalnet_kernel(%arg0: i32, %arg1: i32, %arg2: memref<8x8x16xf32, #tpu.memory_space<vmem>>, %arg3: memref<8x128xf32, #tpu.memory_space<vmem>>, %arg4: memref<8x128xf32, #tpu.memory_space<vmem>>, %arg5: memref<16x512xbf16, #tpu.memory_space<vmem>>, %arg6: memref<128x512xbf16, #tpu.memory_space<vmem>>, %arg7: memref<1x512xf32, #tpu.memory_space<vmem>>, %arg8: memref<128x128xbf16, #tpu.memory_space<vmem>>, %arg9: memref<1x128xf32, #tpu.memory_space<vmem>>, %arg10: memref<8x8x128xf32, #tpu.memory_space<vmem>>, %arg11: memref<8x128xf32, #tpu.memory_space<vmem>>, %arg12: memref<8x128xf32, #tpu.memory_space<vmem>>, %arg13: memref<8x8x512xf32, #tpu.memory_space<vmem>>, %arg14: memref<8x8x128xf32, #tpu.memory_space<vmem>>, %arg15: memref<8x128xf32, #tpu.memory_space<vmem>>, %arg16: memref<8x128xf32, #tpu.memory_space<vmem>>) attributes {dimension_semantics = [#tpu.dimension_semantics<parallel>, #tpu.dimension_semantics<arbitrary>], iteration_bounds = array<i64: 1, 1>, scalar_prefetch = 0 : i64, scratch_operands = 4 : i64, tpu.core_type = #tpu.core_type<tc>, window_params = [{transform_indices = @transform_0, window_bounds = array<i64: 8, 8, 16>}, {transform_indices = @transform_1, window_bounds = array<i64: 8, 128>}, {transform_indices = @transform_2, window_bounds = array<i64: 8, 128>}, {pipeline_mode = #tpu.pipeline_mode<synchronous>, transform_indices = @transform_3, window_bounds = array<i64: 16, 512>}, {pipeline_mode = #tpu.pipeline_mode<synchronous>, transform_indices = @transform_4, window_bounds = array<i64: 128, 512>}, {pipeline_mode = #tpu.pipeline_mode<synchronous>, transform_indices = @transform_5, window_bounds = array<i64: 1, 512>}, {pipeline_mode = #tpu.pipeline_mode<synchronous>, transform_indices = @transform_6, window_bounds = array<i64: 128, 128>}, {pipeline_mode = #tpu.pipeline_mode<synchronous>, transform_indices = @transform_7, window_bounds = array<i64: 1, 128>}, {transform_indices = @transform_8, window_bounds = array<i64: 8, 8, 128>}, {transform_indices = @transform_9, window_bounds = array<i64: 8, 128>}, {transform_indices = @transform_10, window_bounds = array<i64: 8, 128>}]} {
    %c0_i32 = arith.constant 0 : i32
    %0 = arith.cmpi eq, %arg1, %c0_i32 : i32
    %1 = arith.extui %0 : i1 to i32
    %c0_i32_0 = arith.constant 0 : i32
    %2 = arith.cmpi ne, %1, %c0_i32_0 : i32
    scf.if %2 {
      %c0_146 = arith.constant 0 : index
      %c0_147 = arith.constant 0 : index
      %359 = vector.load %arg3[%c0_146, %c0_147] : memref<8x128xf32, #tpu.memory_space<vmem>>, vector<8x128xf32>
      %c0_148 = arith.constant 0 : index
      %c0_149 = arith.constant 0 : index
      %360 = vector.load %arg15[%c0_148, %c0_149] : memref<8x128xf32, #tpu.memory_space<vmem>>, vector<8x128xf32>
      tpu.vector_store %arg15[%c0_148, %c0_149], %359 {strides = array<i32>} : memref<8x128xf32, #tpu.memory_space<vmem>>, vector<8x128xf32>,
      %c0_150 = arith.constant 0 : index
      %c0_151 = arith.constant 0 : index
      %361 = vector.load %arg4[%c0_150, %c0_151] : memref<8x128xf32, #tpu.memory_space<vmem>>, vector<8x128xf32>
      %c0_152 = arith.constant 0 : index
      %c0_153 = arith.constant 0 : index
      %362 = vector.load %arg16[%c0_152, %c0_153] : memref<8x128xf32, #tpu.memory_space<vmem>>, vector<8x128xf32>
      tpu.vector_store %arg16[%c0_152, %c0_153], %361 {strides = array<i32>} : memref<8x128xf32, #tpu.memory_space<vmem>>, vector<8x128xf32>,
    } else {
    }
    %c0 = arith.constant 0 : index
    %c0_1 = arith.constant 0 : index
    %c0_2 = arith.constant 0 : index
    %3 = vector.load %arg2[%c0, %c0_1, %c0_2] : memref<8x8x16xf32, #tpu.memory_space<vmem>>, vector<8x8x16xf32>
    %4 = vector.shape_cast %3 : vector<8x8x16xf32> to vector<64x16xf32>
    %5 = arith.truncf %4 : vector<64x16xf32> to vector<64x16xbf16>
    %c0_3 = arith.constant 0 : index
    %c0_4 = arith.constant 0 : index
    %6 = vector.load %arg5[%c0_3, %c0_4] : memref<16x512xbf16, #tpu.memory_space<vmem>>, vector<16x512xbf16>
    %cst = arith.constant dense<0.000000e+00> : vector<64x512xf32>
    %7 = tpu.matmul %5, %6, %cst {dimension_numbers = #tpu.dot_dimension_numbers<[1], [0], [0], [1], [0, 0, 1, 1], [], []>} : vector<64x16xbf16>, vector<16x512xbf16>, vector<64x512xf32> -> vector<64x512xf32>
    %c0_5 = arith.constant 0 : index
    %c0_6 = arith.constant 0 : index
    %8 = vector.load %arg7[%c0_5, %c0_6] : memref<1x512xf32, #tpu.memory_space<vmem>>, vector<1x512xf32>
    %9 = vector.broadcast %8 : vector<1x512xf32> to vector<64x512xf32>
    %10 = arith.addf %7, %9 : vector<64x512xf32>
    %11 = vector.shape_cast %10 : vector<64x512xf32> to vector<8x8x512xf32>
    %c0_7 = arith.constant 0 : index
    %c0_8 = arith.constant 0 : index
    %c0_9 = arith.constant 0 : index
    %12 = vector.load %arg13[%c0_7, %c0_8, %c0_9] : memref<8x8x512xf32, #tpu.memory_space<vmem>>, vector<8x8x512xf32>
    tpu.vector_store %arg13[%c0_7, %c0_8, %c0_9], %11 {strides = array<i32>} : memref<8x8x512xf32, #tpu.memory_space<vmem>>, vector<8x8x512xf32>,
    %c0_10 = arith.constant 0 : index
    %c0_11 = arith.constant 0 : index
    %13 = vector.load %arg6[%c0_10, %c0_11] : memref<128x512xbf16, #tpu.memory_space<vmem>>, vector<128x512xbf16>
    %c0_12 = arith.constant 0 : index
    %c0_13 = arith.constant 0 : index
    %14 = vector.load %arg15[%c0_12, %c0_13] : memref<8x128xf32, #tpu.memory_space<vmem>>, vector<8x128xf32>
    %c0_14 = arith.constant 0 : index
    %c0_15 = arith.constant 0 : index
    %15 = vector.load %arg16[%c0_14, %c0_15] : memref<8x128xf32, #tpu.memory_space<vmem>>, vector<8x128xf32>
    %c0_i32_16 = arith.constant 0 : i32
    %16 = arith.index_cast %c0_i32_16 : i32 to index
    %c0_17 = arith.constant 0 : index
    %c0_18 = arith.constant 0 : index
    %17 = vector.load %arg13[%16, %c0_17, %c0_18] : memref<8x8x512xf32, #tpu.memory_space<vmem>>, vector<1x8x512xf32>
    %18 = vector.shape_cast %17 : vector<1x8x512xf32> to vector<8x512xf32>
    %19 = arith.truncf %14 : vector<8x128xf32> to vector<8x128xbf16>
    %cst_19 = arith.constant dense<0.000000e+00> : vector<8x512xf32>
    %20 = tpu.matmul %19, %13, %cst_19 {dimension_numbers = #tpu.dot_dimension_numbers<[1], [0], [0], [1], [0, 0, 1, 1], [], []>} : vector<8x128xbf16>, vector<128x512xbf16>, vector<8x512xf32> -> vector<8x512xf32>
    %21 = arith.addf %18, %20 : vector<8x512xf32>
    %22 = vector.extract_strided_slice %21 {offsets = [0, 0], sizes = [8, 128], strides = [1, 1]} : vector<8x512xf32> to vector<8x128xf32>
    %cst_20 = arith.constant 5.000000e-01 : f32
    %23 = vector.broadcast %cst_20 : f32 to vector<8x128xf32>
    %24 = arith.mulf %23, %22 : vector<8x128xf32>
    %25 = math.tanh %24 : vector<8x128xf32>
    %cst_21 = arith.constant 5.000000e-01 : f32
    %26 = vector.broadcast %cst_21 : f32 to vector<8x128xf32>
    %27 = arith.mulf %26, %25 : vector<8x128xf32>
    %cst_22 = arith.constant 5.000000e-01 : f32
    %28 = vector.broadcast %cst_22 : f32 to vector<8x128xf32>
    %29 = arith.addf %27, %28 : vector<8x128xf32>
    %30 = vector.extract_strided_slice %21 {offsets = [0, 128], sizes = [8, 128], strides = [1, 1]} : vector<8x512xf32> to vector<8x128xf32>
    %cst_23 = arith.constant 5.000000e-01 : f32
    %31 = vector.broadcast %cst_23 : f32 to vector<8x128xf32>
    %32 = arith.mulf %31, %30 : vector<8x128xf32>
    %33 = math.tanh %32 : vector<8x128xf32>
    %cst_24 = arith.constant 5.000000e-01 : f32
    %34 = vector.broadcast %cst_24 : f32 to vector<8x128xf32>
    %35 = arith.mulf %34, %33 : vector<8x128xf32>
    %cst_25 = arith.constant 5.000000e-01 : f32
    %36 = vector.broadcast %cst_25 : f32 to vector<8x128xf32>
    %37 = arith.addf %35, %36 : vector<8x128xf32>
    %38 = vector.extract_strided_slice %21 {offsets = [0, 256], sizes = [8, 128], strides = [1, 1]} : vector<8x512xf32> to vector<8x128xf32>
    %39 = math.tanh %38 : vector<8x128xf32>
    %40 = vector.extract_strided_slice %21 {offsets = [0, 384], sizes = [8, 128], strides = [1, 1]} : vector<8x512xf32> to vector<8x128xf32>
    %cst_26 = arith.constant 5.000000e-01 : f32
    %41 = vector.broadcast %cst_26 : f32 to vector<8x128xf32>
    %42 = arith.mulf %41, %40 : vector<8x128xf32>
    %43 = math.tanh %42 : vector<8x128xf32>
    %cst_27 = arith.constant 5.000000e-01 : f32
    %44 = vector.broadcast %cst_27 : f32 to vector<8x128xf32>
    %45 = arith.mulf %44, %43 : vector<8x128xf32>
    %cst_28 = arith.constant 5.000000e-01 : f32
    %46 = vector.broadcast %cst_28 : f32 to vector<8x128xf32>
    %47 = arith.addf %45, %46 : vector<8x128xf32>
    %48 = arith.mulf %37, %15 : vector<8x128xf32>
    %49 = arith.mulf %29, %39 : vector<8x128xf32>
    %50 = arith.addf %48, %49 : vector<8x128xf32>
    %51 = math.tanh %50 : vector<8x128xf32>
    %52 = arith.mulf %47, %51 : vector<8x128xf32>
    %53 = arith.index_cast %c0_i32_16 : i32 to index
    %c0_29 = arith.constant 0 : index
    %c0_30 = arith.constant 0 : index
    %54 = vector.load %arg14[%53, %c0_29, %c0_30] : memref<8x8x128xf32, #tpu.memory_space<vmem>>, vector<1x8x128xf32>
    %55 = vector.shape_cast %54 : vector<1x8x128xf32> to vector<8x128xf32>
    %56 = vector.shape_cast %52 : vector<8x128xf32> to vector<1x8x128xf32>
    tpu.vector_store %arg14[%53, %c0_29, %c0_30], %56 {strides = array<i32>} : memref<8x8x128xf32, #tpu.memory_space<vmem>>, vector<1x8x128xf32>,
    %c1_i32 = arith.constant 1 : i32
    %57 = arith.index_cast %c1_i32 : i32 to index
    %c0_31 = arith.constant 0 : index
    %c0_32 = arith.constant 0 : index
    %58 = vector.load %arg13[%57, %c0_31, %c0_32] : memref<8x8x512xf32, #tpu.memory_space<vmem>>, vector<1x8x512xf32>
    %59 = vector.shape_cast %58 : vector<1x8x512xf32> to vector<8x512xf32>
    %60 = arith.truncf %52 : vector<8x128xf32> to vector<8x128xbf16>
    %cst_33 = arith.constant dense<0.000000e+00> : vector<8x512xf32>
    %61 = tpu.matmul %60, %13, %cst_33 {dimension_numbers = #tpu.dot_dimension_numbers<[1], [0], [0], [1], [0, 0, 1, 1], [], []>} : vector<8x128xbf16>, vector<128x512xbf16>, vector<8x512xf32> -> vector<8x512xf32>
    %62 = arith.addf %59, %61 : vector<8x512xf32>
    %63 = vector.extract_strided_slice %62 {offsets = [0, 0], sizes = [8, 128], strides = [1, 1]} : vector<8x512xf32> to vector<8x128xf32>
    %cst_34 = arith.constant 5.000000e-01 : f32
    %64 = vector.broadcast %cst_34 : f32 to vector<8x128xf32>
    %65 = arith.mulf %64, %63 : vector<8x128xf32>
    %66 = math.tanh %65 : vector<8x128xf32>
    %cst_35 = arith.constant 5.000000e-01 : f32
    %67 = vector.broadcast %cst_35 : f32 to vector<8x128xf32>
    %68 = arith.mulf %67, %66 : vector<8x128xf32>
    %cst_36 = arith.constant 5.000000e-01 : f32
    %69 = vector.broadcast %cst_36 : f32 to vector<8x128xf32>
    %70 = arith.addf %68, %69 : vector<8x128xf32>
    %71 = vector.extract_strided_slice %62 {offsets = [0, 128], sizes = [8, 128], strides = [1, 1]} : vector<8x512xf32> to vector<8x128xf32>
    %cst_37 = arith.constant 5.000000e-01 : f32
    %72 = vector.broadcast %cst_37 : f32 to vector<8x128xf32>
    %73 = arith.mulf %72, %71 : vector<8x128xf32>
    %74 = math.tanh %73 : vector<8x128xf32>
    %cst_38 = arith.constant 5.000000e-01 : f32
    %75 = vector.broadcast %cst_38 : f32 to vector<8x128xf32>
    %76 = arith.mulf %75, %74 : vector<8x128xf32>
    %cst_39 = arith.constant 5.000000e-01 : f32
    %77 = vector.broadcast %cst_39 : f32 to vector<8x128xf32>
    %78 = arith.addf %76, %77 : vector<8x128xf32>
    %79 = vector.extract_strided_slice %62 {offsets = [0, 256], sizes = [8, 128], strides = [1, 1]} : vector<8x512xf32> to vector<8x128xf32>
    %80 = math.tanh %79 : vector<8x128xf32>
    %81 = vector.extract_strided_slice %62 {offsets = [0, 384], sizes = [8, 128], strides = [1, 1]} : vector<8x512xf32> to vector<8x128xf32>
    %cst_40 = arith.constant 5.000000e-01 : f32
    %82 = vector.broadcast %cst_40 : f32 to vector<8x128xf32>
    %83 = arith.mulf %82, %81 : vector<8x128xf32>
    %84 = math.tanh %83 : vector<8x128xf32>
    %cst_41 = arith.constant 5.000000e-01 : f32
    %85 = vector.broadcast %cst_41 : f32 to vector<8x128xf32>
    %86 = arith.mulf %85, %84 : vector<8x128xf32>
    %cst_42 = arith.constant 5.000000e-01 : f32
    %87 = vector.broadcast %cst_42 : f32 to vector<8x128xf32>
    %88 = arith.addf %86, %87 : vector<8x128xf32>
    %89 = arith.mulf %78, %50 : vector<8x128xf32>
    %90 = arith.mulf %70, %80 : vector<8x128xf32>
    %91 = arith.addf %89, %90 : vector<8x128xf32>
    %92 = math.tanh %91 : vector<8x128xf32>
    %93 = arith.mulf %88, %92 : vector<8x128xf32>
    %94 = arith.index_cast %c1_i32 : i32 to index
    %c0_43 = arith.constant 0 : index
    %c0_44 = arith.constant 0 : index
    %95 = vector.load %arg14[%94, %c0_43, %c0_44] : memref<8x8x128xf32, #tpu.memory_space<vmem>>, vector<1x8x128xf32>
    %96 = vector.shape_cast %95 : vector<1x8x128xf32> to vector<8x128xf32>
    %97 = vector.shape_cast %93 : vector<8x128xf32> to vector<1x8x128xf32>
    tpu.vector_store %arg14[%94, %c0_43, %c0_44], %97 {strides = array<i32>} : memref<8x8x128xf32, #tpu.memory_space<vmem>>, vector<1x8x128xf32>,
    %c2_i32 = arith.constant 2 : i32
    %98 = arith.index_cast %c2_i32 : i32 to index
    %c0_45 = arith.constant 0 : index
    %c0_46 = arith.constant 0 : index
    %99 = vector.load %arg13[%98, %c0_45, %c0_46] : memref<8x8x512xf32, #tpu.memory_space<vmem>>, vector<1x8x512xf32>
    %100 = vector.shape_cast %99 : vector<1x8x512xf32> to vector<8x512xf32>
    %101 = arith.truncf %93 : vector<8x128xf32> to vector<8x128xbf16>
    %cst_47 = arith.constant dense<0.000000e+00> : vector<8x512xf32>
    %102 = tpu.matmul %101, %13, %cst_47 {dimension_numbers = #tpu.dot_dimension_numbers<[1], [0], [0], [1], [0, 0, 1, 1], [], []>} : vector<8x128xbf16>, vector<128x512xbf16>, vector<8x512xf32> -> vector<8x512xf32>
    %103 = arith.addf %100, %102 : vector<8x512xf32>
    %104 = vector.extract_strided_slice %103 {offsets = [0, 0], sizes = [8, 128], strides = [1, 1]} : vector<8x512xf32> to vector<8x128xf32>
    %cst_48 = arith.constant 5.000000e-01 : f32
    %105 = vector.broadcast %cst_48 : f32 to vector<8x128xf32>
    %106 = arith.mulf %105, %104 : vector<8x128xf32>
    %107 = math.tanh %106 : vector<8x128xf32>
    %cst_49 = arith.constant 5.000000e-01 : f32
    %108 = vector.broadcast %cst_49 : f32 to vector<8x128xf32>
    %109 = arith.mulf %108, %107 : vector<8x128xf32>
    %cst_50 = arith.constant 5.000000e-01 : f32
    %110 = vector.broadcast %cst_50 : f32 to vector<8x128xf32>
    %111 = arith.addf %109, %110 : vector<8x128xf32>
    %112 = vector.extract_strided_slice %103 {offsets = [0, 128], sizes = [8, 128], strides = [1, 1]} : vector<8x512xf32> to vector<8x128xf32>
    %cst_51 = arith.constant 5.000000e-01 : f32
    %113 = vector.broadcast %cst_51 : f32 to vector<8x128xf32>
    %114 = arith.mulf %113, %112 : vector<8x128xf32>
    %115 = math.tanh %114 : vector<8x128xf32>
    %cst_52 = arith.constant 5.000000e-01 : f32
    %116 = vector.broadcast %cst_52 : f32 to vector<8x128xf32>
    %117 = arith.mulf %116, %115 : vector<8x128xf32>
    %cst_53 = arith.constant 5.000000e-01 : f32
    %118 = vector.broadcast %cst_53 : f32 to vector<8x128xf32>
    %119 = arith.addf %117, %118 : vector<8x128xf32>
    %120 = vector.extract_strided_slice %103 {offsets = [0, 256], sizes = [8, 128], strides = [1, 1]} : vector<8x512xf32> to vector<8x128xf32>
    %121 = math.tanh %120 : vector<8x128xf32>
    %122 = vector.extract_strided_slice %103 {offsets = [0, 384], sizes = [8, 128], strides = [1, 1]} : vector<8x512xf32> to vector<8x128xf32>
    %cst_54 = arith.constant 5.000000e-01 : f32
    %123 = vector.broadcast %cst_54 : f32 to vector<8x128xf32>
    %124 = arith.mulf %123, %122 : vector<8x128xf32>
    %125 = math.tanh %124 : vector<8x128xf32>
    %cst_55 = arith.constant 5.000000e-01 : f32
    %126 = vector.broadcast %cst_55 : f32 to vector<8x128xf32>
    %127 = arith.mulf %126, %125 : vector<8x128xf32>
    %cst_56 = arith.constant 5.000000e-01 : f32
    %128 = vector.broadcast %cst_56 : f32 to vector<8x128xf32>
    %129 = arith.addf %127, %128 : vector<8x128xf32>
    %130 = arith.mulf %119, %91 : vector<8x128xf32>
    %131 = arith.mulf %111, %121 : vector<8x128xf32>
    %132 = arith.addf %130, %131 : vector<8x128xf32>
    %133 = math.tanh %132 : vector<8x128xf32>
    %134 = arith.mulf %129, %133 : vector<8x128xf32>
    %135 = arith.index_cast %c2_i32 : i32 to index
    %c0_57 = arith.constant 0 : index
    %c0_58 = arith.constant 0 : index
    %136 = vector.load %arg14[%135, %c0_57, %c0_58] : memref<8x8x128xf32, #tpu.memory_space<vmem>>, vector<1x8x128xf32>
    %137 = vector.shape_cast %136 : vector<1x8x128xf32> to vector<8x128xf32>
    %138 = vector.shape_cast %134 : vector<8x128xf32> to vector<1x8x128xf32>
    tpu.vector_store %arg14[%135, %c0_57, %c0_58], %138 {strides = array<i32>} : memref<8x8x128xf32, #tpu.memory_space<vmem>>, vector<1x8x128xf32>,
    %c3_i32 = arith.constant 3 : i32
    %139 = arith.index_cast %c3_i32 : i32 to index
    %c0_59 = arith.constant 0 : index
    %c0_60 = arith.constant 0 : index
    %140 = vector.load %arg13[%139, %c0_59, %c0_60] : memref<8x8x512xf32, #tpu.memory_space<vmem>>, vector<1x8x512xf32>
    %141 = vector.shape_cast %140 : vector<1x8x512xf32> to vector<8x512xf32>
    %142 = arith.truncf %134 : vector<8x128xf32> to vector<8x128xbf16>
    %cst_61 = arith.constant dense<0.000000e+00> : vector<8x512xf32>
    %143 = tpu.matmul %142, %13, %cst_61 {dimension_numbers = #tpu.dot_dimension_numbers<[1], [0], [0], [1], [0, 0, 1, 1], [], []>} : vector<8x128xbf16>, vector<128x512xbf16>, vector<8x512xf32> -> vector<8x512xf32>
    %144 = arith.addf %141, %143 : vector<8x512xf32>
    %145 = vector.extract_strided_slice %144 {offsets = [0, 0], sizes = [8, 128], strides = [1, 1]} : vector<8x512xf32> to vector<8x128xf32>
    %cst_62 = arith.constant 5.000000e-01 : f32
    %146 = vector.broadcast %cst_62 : f32 to vector<8x128xf32>
    %147 = arith.mulf %146, %145 : vector<8x128xf32>
    %148 = math.tanh %147 : vector<8x128xf32>
    %cst_63 = arith.constant 5.000000e-01 : f32
    %149 = vector.broadcast %cst_63 : f32 to vector<8x128xf32>
    %150 = arith.mulf %149, %148 : vector<8x128xf32>
    %cst_64 = arith.constant 5.000000e-01 : f32
    %151 = vector.broadcast %cst_64 : f32 to vector<8x128xf32>
    %152 = arith.addf %150, %151 : vector<8x128xf32>
    %153 = vector.extract_strided_slice %144 {offsets = [0, 128], sizes = [8, 128], strides = [1, 1]} : vector<8x512xf32> to vector<8x128xf32>
    %cst_65 = arith.constant 5.000000e-01 : f32
    %154 = vector.broadcast %cst_65 : f32 to vector<8x128xf32>
    %155 = arith.mulf %154, %153 : vector<8x128xf32>
    %156 = math.tanh %155 : vector<8x128xf32>
    %cst_66 = arith.constant 5.000000e-01 : f32
    %157 = vector.broadcast %cst_66 : f32 to vector<8x128xf32>
    %158 = arith.mulf %157, %156 : vector<8x128xf32>
    %cst_67 = arith.constant 5.000000e-01 : f32
    %159 = vector.broadcast %cst_67 : f32 to vector<8x128xf32>
    %160 = arith.addf %158, %159 : vector<8x128xf32>
    %161 = vector.extract_strided_slice %144 {offsets = [0, 256], sizes = [8, 128], strides = [1, 1]} : vector<8x512xf32> to vector<8x128xf32>
    %162 = math.tanh %161 : vector<8x128xf32>
    %163 = vector.extract_strided_slice %144 {offsets = [0, 384], sizes = [8, 128], strides = [1, 1]} : vector<8x512xf32> to vector<8x128xf32>
    %cst_68 = arith.constant 5.000000e-01 : f32
    %164 = vector.broadcast %cst_68 : f32 to vector<8x128xf32>
    %165 = arith.mulf %164, %163 : vector<8x128xf32>
    %166 = math.tanh %165 : vector<8x128xf32>
    %cst_69 = arith.constant 5.000000e-01 : f32
    %167 = vector.broadcast %cst_69 : f32 to vector<8x128xf32>
    %168 = arith.mulf %167, %166 : vector<8x128xf32>
    %cst_70 = arith.constant 5.000000e-01 : f32
    %169 = vector.broadcast %cst_70 : f32 to vector<8x128xf32>
    %170 = arith.addf %168, %169 : vector<8x128xf32>
    %171 = arith.mulf %160, %132 : vector<8x128xf32>
    %172 = arith.mulf %152, %162 : vector<8x128xf32>
    %173 = arith.addf %171, %172 : vector<8x128xf32>
    %174 = math.tanh %173 : vector<8x128xf32>
    %175 = arith.mulf %170, %174 : vector<8x128xf32>
    %176 = arith.index_cast %c3_i32 : i32 to index
    %c0_71 = arith.constant 0 : index
    %c0_72 = arith.constant 0 : index
    %177 = vector.load %arg14[%176, %c0_71, %c0_72] : memref<8x8x128xf32, #tpu.memory_space<vmem>>, vector<1x8x128xf32>
    %178 = vector.shape_cast %177 : vector<1x8x128xf32> to vector<8x128xf32>
    %179 = vector.shape_cast %175 : vector<8x128xf32> to vector<1x8x128xf32>
    tpu.vector_store %arg14[%176, %c0_71, %c0_72], %179 {strides = array<i32>} : memref<8x8x128xf32, #tpu.memory_space<vmem>>, vector<1x8x128xf32>,
    %c4_i32 = arith.constant 4 : i32
    %180 = arith.index_cast %c4_i32 : i32 to index
    %c0_73 = arith.constant 0 : index
    %c0_74 = arith.constant 0 : index
    %181 = vector.load %arg13[%180, %c0_73, %c0_74] : memref<8x8x512xf32, #tpu.memory_space<vmem>>, vector<1x8x512xf32>
    %182 = vector.shape_cast %181 : vector<1x8x512xf32> to vector<8x512xf32>
    %183 = arith.truncf %175 : vector<8x128xf32> to vector<8x128xbf16>
    %cst_75 = arith.constant dense<0.000000e+00> : vector<8x512xf32>
    %184 = tpu.matmul %183, %13, %cst_75 {dimension_numbers = #tpu.dot_dimension_numbers<[1], [0], [0], [1], [0, 0, 1, 1], [], []>} : vector<8x128xbf16>, vector<128x512xbf16>, vector<8x512xf32> -> vector<8x512xf32>
    %185 = arith.addf %182, %184 : vector<8x512xf32>
    %186 = vector.extract_strided_slice %185 {offsets = [0, 0], sizes = [8, 128], strides = [1, 1]} : vector<8x512xf32> to vector<8x128xf32>
    %cst_76 = arith.constant 5.000000e-01 : f32
    %187 = vector.broadcast %cst_76 : f32 to vector<8x128xf32>
    %188 = arith.mulf %187, %186 : vector<8x128xf32>
    %189 = math.tanh %188 : vector<8x128xf32>
    %cst_77 = arith.constant 5.000000e-01 : f32
    %190 = vector.broadcast %cst_77 : f32 to vector<8x128xf32>
    %191 = arith.mulf %190, %189 : vector<8x128xf32>
    %cst_78 = arith.constant 5.000000e-01 : f32
    %192 = vector.broadcast %cst_78 : f32 to vector<8x128xf32>
    %193 = arith.addf %191, %192 : vector<8x128xf32>
    %194 = vector.extract_strided_slice %185 {offsets = [0, 128], sizes = [8, 128], strides = [1, 1]} : vector<8x512xf32> to vector<8x128xf32>
    %cst_79 = arith.constant 5.000000e-01 : f32
    %195 = vector.broadcast %cst_79 : f32 to vector<8x128xf32>
    %196 = arith.mulf %195, %194 : vector<8x128xf32>
    %197 = math.tanh %196 : vector<8x128xf32>
    %cst_80 = arith.constant 5.000000e-01 : f32
    %198 = vector.broadcast %cst_80 : f32 to vector<8x128xf32>
    %199 = arith.mulf %198, %197 : vector<8x128xf32>
    %cst_81 = arith.constant 5.000000e-01 : f32
    %200 = vector.broadcast %cst_81 : f32 to vector<8x128xf32>
    %201 = arith.addf %199, %200 : vector<8x128xf32>
    %202 = vector.extract_strided_slice %185 {offsets = [0, 256], sizes = [8, 128], strides = [1, 1]} : vector<8x512xf32> to vector<8x128xf32>
    %203 = math.tanh %202 : vector<8x128xf32>
    %204 = vector.extract_strided_slice %185 {offsets = [0, 384], sizes = [8, 128], strides = [1, 1]} : vector<8x512xf32> to vector<8x128xf32>
    %cst_82 = arith.constant 5.000000e-01 : f32
    %205 = vector.broadcast %cst_82 : f32 to vector<8x128xf32>
    %206 = arith.mulf %205, %204 : vector<8x128xf32>
    %207 = math.tanh %206 : vector<8x128xf32>
    %cst_83 = arith.constant 5.000000e-01 : f32
    %208 = vector.broadcast %cst_83 : f32 to vector<8x128xf32>
    %209 = arith.mulf %208, %207 : vector<8x128xf32>
    %cst_84 = arith.constant 5.000000e-01 : f32
    %210 = vector.broadcast %cst_84 : f32 to vector<8x128xf32>
    %211 = arith.addf %209, %210 : vector<8x128xf32>
    %212 = arith.mulf %201, %173 : vector<8x128xf32>
    %213 = arith.mulf %193, %203 : vector<8x128xf32>
    %214 = arith.addf %212, %213 : vector<8x128xf32>
    %215 = math.tanh %214 : vector<8x128xf32>
    %216 = arith.mulf %211, %215 : vector<8x128xf32>
    %217 = arith.index_cast %c4_i32 : i32 to index
    %c0_85 = arith.constant 0 : index
    %c0_86 = arith.constant 0 : index
    %218 = vector.load %arg14[%217, %c0_85, %c0_86] : memref<8x8x128xf32, #tpu.memory_space<vmem>>, vector<1x8x128xf32>
    %219 = vector.shape_cast %218 : vector<1x8x128xf32> to vector<8x128xf32>
    %220 = vector.shape_cast %216 : vector<8x128xf32> to vector<1x8x128xf32>
    tpu.vector_store %arg14[%217, %c0_85, %c0_86], %220 {strides = array<i32>} : memref<8x8x128xf32, #tpu.memory_space<vmem>>, vector<1x8x128xf32>,
    %c5_i32 = arith.constant 5 : i32
    %221 = arith.index_cast %c5_i32 : i32 to index
    %c0_87 = arith.constant 0 : index
    %c0_88 = arith.constant 0 : index
    %222 = vector.load %arg13[%221, %c0_87, %c0_88] : memref<8x8x512xf32, #tpu.memory_space<vmem>>, vector<1x8x512xf32>
    %223 = vector.shape_cast %222 : vector<1x8x512xf32> to vector<8x512xf32>
    %224 = arith.truncf %216 : vector<8x128xf32> to vector<8x128xbf16>
    %cst_89 = arith.constant dense<0.000000e+00> : vector<8x512xf32>
    %225 = tpu.matmul %224, %13, %cst_89 {dimension_numbers = #tpu.dot_dimension_numbers<[1], [0], [0], [1], [0, 0, 1, 1], [], []>} : vector<8x128xbf16>, vector<128x512xbf16>, vector<8x512xf32> -> vector<8x512xf32>
    %226 = arith.addf %223, %225 : vector<8x512xf32>
    %227 = vector.extract_strided_slice %226 {offsets = [0, 0], sizes = [8, 128], strides = [1, 1]} : vector<8x512xf32> to vector<8x128xf32>
    %cst_90 = arith.constant 5.000000e-01 : f32
    %228 = vector.broadcast %cst_90 : f32 to vector<8x128xf32>
    %229 = arith.mulf %228, %227 : vector<8x128xf32>
    %230 = math.tanh %229 : vector<8x128xf32>
    %cst_91 = arith.constant 5.000000e-01 : f32
    %231 = vector.broadcast %cst_91 : f32 to vector<8x128xf32>
    %232 = arith.mulf %231, %230 : vector<8x128xf32>
    %cst_92 = arith.constant 5.000000e-01 : f32
    %233 = vector.broadcast %cst_92 : f32 to vector<8x128xf32>
    %234 = arith.addf %232, %233 : vector<8x128xf32>
    %235 = vector.extract_strided_slice %226 {offsets = [0, 128], sizes = [8, 128], strides = [1, 1]} : vector<8x512xf32> to vector<8x128xf32>
    %cst_93 = arith.constant 5.000000e-01 : f32
    %236 = vector.broadcast %cst_93 : f32 to vector<8x128xf32>
    %237 = arith.mulf %236, %235 : vector<8x128xf32>
    %238 = math.tanh %237 : vector<8x128xf32>
    %cst_94 = arith.constant 5.000000e-01 : f32
    %239 = vector.broadcast %cst_94 : f32 to vector<8x128xf32>
    %240 = arith.mulf %239, %238 : vector<8x128xf32>
    %cst_95 = arith.constant 5.000000e-01 : f32
    %241 = vector.broadcast %cst_95 : f32 to vector<8x128xf32>
    %242 = arith.addf %240, %241 : vector<8x128xf32>
    %243 = vector.extract_strided_slice %226 {offsets = [0, 256], sizes = [8, 128], strides = [1, 1]} : vector<8x512xf32> to vector<8x128xf32>
    %244 = math.tanh %243 : vector<8x128xf32>
    %245 = vector.extract_strided_slice %226 {offsets = [0, 384], sizes = [8, 128], strides = [1, 1]} : vector<8x512xf32> to vector<8x128xf32>
    %cst_96 = arith.constant 5.000000e-01 : f32
    %246 = vector.broadcast %cst_96 : f32 to vector<8x128xf32>
    %247 = arith.mulf %246, %245 : vector<8x128xf32>
    %248 = math.tanh %247 : vector<8x128xf32>
    %cst_97 = arith.constant 5.000000e-01 : f32
    %249 = vector.broadcast %cst_97 : f32 to vector<8x128xf32>
    %250 = arith.mulf %249, %248 : vector<8x128xf32>
    %cst_98 = arith.constant 5.000000e-01 : f32
    %251 = vector.broadcast %cst_98 : f32 to vector<8x128xf32>
    %252 = arith.addf %250, %251 : vector<8x128xf32>
    %253 = arith.mulf %242, %214 : vector<8x128xf32>
    %254 = arith.mulf %234, %244 : vector<8x128xf32>
    %255 = arith.addf %253, %254 : vector<8x128xf32>
    %256 = math.tanh %255 : vector<8x128xf32>
    %257 = arith.mulf %252, %256 : vector<8x128xf32>
    %258 = arith.index_cast %c5_i32 : i32 to index
    %c0_99 = arith.constant 0 : index
    %c0_100 = arith.constant 0 : index
    %259 = vector.load %arg14[%258, %c0_99, %c0_100] : memref<8x8x128xf32, #tpu.memory_space<vmem>>, vector<1x8x128xf32>
    %260 = vector.shape_cast %259 : vector<1x8x128xf32> to vector<8x128xf32>
    %261 = vector.shape_cast %257 : vector<8x128xf32> to vector<1x8x128xf32>
    tpu.vector_store %arg14[%258, %c0_99, %c0_100], %261 {strides = array<i32>} : memref<8x8x128xf32, #tpu.memory_space<vmem>>, vector<1x8x128xf32>,
    %c6_i32 = arith.constant 6 : i32
    %262 = arith.index_cast %c6_i32 : i32 to index
    %c0_101 = arith.constant 0 : index
    %c0_102 = arith.constant 0 : index
    %263 = vector.load %arg13[%262, %c0_101, %c0_102] : memref<8x8x512xf32, #tpu.memory_space<vmem>>, vector<1x8x512xf32>
    %264 = vector.shape_cast %263 : vector<1x8x512xf32> to vector<8x512xf32>
    %265 = arith.truncf %257 : vector<8x128xf32> to vector<8x128xbf16>
    %cst_103 = arith.constant dense<0.000000e+00> : vector<8x512xf32>
    %266 = tpu.matmul %265, %13, %cst_103 {dimension_numbers = #tpu.dot_dimension_numbers<[1], [0], [0], [1], [0, 0, 1, 1], [], []>} : vector<8x128xbf16>, vector<128x512xbf16>, vector<8x512xf32> -> vector<8x512xf32>
    %267 = arith.addf %264, %266 : vector<8x512xf32>
    %268 = vector.extract_strided_slice %267 {offsets = [0, 0], sizes = [8, 128], strides = [1, 1]} : vector<8x512xf32> to vector<8x128xf32>
    %cst_104 = arith.constant 5.000000e-01 : f32
    %269 = vector.broadcast %cst_104 : f32 to vector<8x128xf32>
    %270 = arith.mulf %269, %268 : vector<8x128xf32>
    %271 = math.tanh %270 : vector<8x128xf32>
    %cst_105 = arith.constant 5.000000e-01 : f32
    %272 = vector.broadcast %cst_105 : f32 to vector<8x128xf32>
    %273 = arith.mulf %272, %271 : vector<8x128xf32>
    %cst_106 = arith.constant 5.000000e-01 : f32
    %274 = vector.broadcast %cst_106 : f32 to vector<8x128xf32>
    %275 = arith.addf %273, %274 : vector<8x128xf32>
    %276 = vector.extract_strided_slice %267 {offsets = [0, 128], sizes = [8, 128], strides = [1, 1]} : vector<8x512xf32> to vector<8x128xf32>
    %cst_107 = arith.constant 5.000000e-01 : f32
    %277 = vector.broadcast %cst_107 : f32 to vector<8x128xf32>
    %278 = arith.mulf %277, %276 : vector<8x128xf32>
    %279 = math.tanh %278 : vector<8x128xf32>
    %cst_108 = arith.constant 5.000000e-01 : f32
    %280 = vector.broadcast %cst_108 : f32 to vector<8x128xf32>
    %281 = arith.mulf %280, %279 : vector<8x128xf32>
    %cst_109 = arith.constant 5.000000e-01 : f32
    %282 = vector.broadcast %cst_109 : f32 to vector<8x128xf32>
    %283 = arith.addf %281, %282 : vector<8x128xf32>
    %284 = vector.extract_strided_slice %267 {offsets = [0, 256], sizes = [8, 128], strides = [1, 1]} : vector<8x512xf32> to vector<8x128xf32>
    %285 = math.tanh %284 : vector<8x128xf32>
    %286 = vector.extract_strided_slice %267 {offsets = [0, 384], sizes = [8, 128], strides = [1, 1]} : vector<8x512xf32> to vector<8x128xf32>
    %cst_110 = arith.constant 5.000000e-01 : f32
    %287 = vector.broadcast %cst_110 : f32 to vector<8x128xf32>
    %288 = arith.mulf %287, %286 : vector<8x128xf32>
    %289 = math.tanh %288 : vector<8x128xf32>
    %cst_111 = arith.constant 5.000000e-01 : f32
    %290 = vector.broadcast %cst_111 : f32 to vector<8x128xf32>
    %291 = arith.mulf %290, %289 : vector<8x128xf32>
    %cst_112 = arith.constant 5.000000e-01 : f32
    %292 = vector.broadcast %cst_112 : f32 to vector<8x128xf32>
    %293 = arith.addf %291, %292 : vector<8x128xf32>
    %294 = arith.mulf %283, %255 : vector<8x128xf32>
    %295 = arith.mulf %275, %285 : vector<8x128xf32>
    %296 = arith.addf %294, %295 : vector<8x128xf32>
    %297 = math.tanh %296 : vector<8x128xf32>
    %298 = arith.mulf %293, %297 : vector<8x128xf32>
    %299 = arith.index_cast %c6_i32 : i32 to index
    %c0_113 = arith.constant 0 : index
    %c0_114 = arith.constant 0 : index
    %300 = vector.load %arg14[%299, %c0_113, %c0_114] : memref<8x8x128xf32, #tpu.memory_space<vmem>>, vector<1x8x128xf32>
    %301 = vector.shape_cast %300 : vector<1x8x128xf32> to vector<8x128xf32>
    %302 = vector.shape_cast %298 : vector<8x128xf32> to vector<1x8x128xf32>
    tpu.vector_store %arg14[%299, %c0_113, %c0_114], %302 {strides = array<i32>} : memref<8x8x128xf32, #tpu.memory_space<vmem>>, vector<1x8x128xf32>,
    %c7_i32 = arith.constant 7 : i32
    %303 = arith.index_cast %c7_i32 : i32 to index
    %c0_115 = arith.constant 0 : index
    %c0_116 = arith.constant 0 : index
    %304 = vector.load %arg13[%303, %c0_115, %c0_116] : memref<8x8x512xf32, #tpu.memory_space<vmem>>, vector<1x8x512xf32>
    %305 = vector.shape_cast %304 : vector<1x8x512xf32> to vector<8x512xf32>
    %306 = arith.truncf %298 : vector<8x128xf32> to vector<8x128xbf16>
    %cst_117 = arith.constant dense<0.000000e+00> : vector<8x512xf32>
    %307 = tpu.matmul %306, %13, %cst_117 {dimension_numbers = #tpu.dot_dimension_numbers<[1], [0], [0], [1], [0, 0, 1, 1], [], []>} : vector<8x128xbf16>, vector<128x512xbf16>, vector<8x512xf32> -> vector<8x512xf32>
    %308 = arith.addf %305, %307 : vector<8x512xf32>
    %309 = vector.extract_strided_slice %308 {offsets = [0, 0], sizes = [8, 128], strides = [1, 1]} : vector<8x512xf32> to vector<8x128xf32>
    %cst_118 = arith.constant 5.000000e-01 : f32
    %310 = vector.broadcast %cst_118 : f32 to vector<8x128xf32>
    %311 = arith.mulf %310, %309 : vector<8x128xf32>
    %312 = math.tanh %311 : vector<8x128xf32>
    %cst_119 = arith.constant 5.000000e-01 : f32
    %313 = vector.broadcast %cst_119 : f32 to vector<8x128xf32>
    %314 = arith.mulf %313, %312 : vector<8x128xf32>
    %cst_120 = arith.constant 5.000000e-01 : f32
    %315 = vector.broadcast %cst_120 : f32 to vector<8x128xf32>
    %316 = arith.addf %314, %315 : vector<8x128xf32>
    %317 = vector.extract_strided_slice %308 {offsets = [0, 128], sizes = [8, 128], strides = [1, 1]} : vector<8x512xf32> to vector<8x128xf32>
    %cst_121 = arith.constant 5.000000e-01 : f32
    %318 = vector.broadcast %cst_121 : f32 to vector<8x128xf32>
    %319 = arith.mulf %318, %317 : vector<8x128xf32>
    %320 = math.tanh %319 : vector<8x128xf32>
    %cst_122 = arith.constant 5.000000e-01 : f32
    %321 = vector.broadcast %cst_122 : f32 to vector<8x128xf32>
    %322 = arith.mulf %321, %320 : vector<8x128xf32>
    %cst_123 = arith.constant 5.000000e-01 : f32
    %323 = vector.broadcast %cst_123 : f32 to vector<8x128xf32>
    %324 = arith.addf %322, %323 : vector<8x128xf32>
    %325 = vector.extract_strided_slice %308 {offsets = [0, 256], sizes = [8, 128], strides = [1, 1]} : vector<8x512xf32> to vector<8x128xf32>
    %326 = math.tanh %325 : vector<8x128xf32>
    %327 = vector.extract_strided_slice %308 {offsets = [0, 384], sizes = [8, 128], strides = [1, 1]} : vector<8x512xf32> to vector<8x128xf32>
    %cst_124 = arith.constant 5.000000e-01 : f32
    %328 = vector.broadcast %cst_124 : f32 to vector<8x128xf32>
    %329 = arith.mulf %328, %327 : vector<8x128xf32>
    %330 = math.tanh %329 : vector<8x128xf32>
    %cst_125 = arith.constant 5.000000e-01 : f32
    %331 = vector.broadcast %cst_125 : f32 to vector<8x128xf32>
    %332 = arith.mulf %331, %330 : vector<8x128xf32>
    %cst_126 = arith.constant 5.000000e-01 : f32
    %333 = vector.broadcast %cst_126 : f32 to vector<8x128xf32>
    %334 = arith.addf %332, %333 : vector<8x128xf32>
    %335 = arith.mulf %324, %296 : vector<8x128xf32>
    %336 = arith.mulf %316, %326 : vector<8x128xf32>
    %337 = arith.addf %335, %336 : vector<8x128xf32>
    %338 = math.tanh %337 : vector<8x128xf32>
    %339 = arith.mulf %334, %338 : vector<8x128xf32>
    %340 = arith.index_cast %c7_i32 : i32 to index
    %c0_127 = arith.constant 0 : index
    %c0_128 = arith.constant 0 : index
    %341 = vector.load %arg14[%340, %c0_127, %c0_128] : memref<8x8x128xf32, #tpu.memory_space<vmem>>, vector<1x8x128xf32>
    %342 = vector.shape_cast %341 : vector<1x8x128xf32> to vector<8x128xf32>
    %343 = vector.shape_cast %339 : vector<8x128xf32> to vector<1x8x128xf32>
    tpu.vector_store %arg14[%340, %c0_127, %c0_128], %343 {strides = array<i32>} : memref<8x8x128xf32, #tpu.memory_space<vmem>>, vector<1x8x128xf32>,
    %c8_i32 = arith.constant 8 : i32
    %c0_129 = arith.constant 0 : index
    %c0_130 = arith.constant 0 : index
    %344 = vector.load %arg15[%c0_129, %c0_130] : memref<8x128xf32, #tpu.memory_space<vmem>>, vector<8x128xf32>
    tpu.vector_store %arg15[%c0_129, %c0_130], %339 {strides = array<i32>} : memref<8x128xf32, #tpu.memory_space<vmem>>, vector<8x128xf32>,
    %c0_131 = arith.constant 0 : index
    %c0_132 = arith.constant 0 : index
    %345 = vector.load %arg16[%c0_131, %c0_132] : memref<8x128xf32, #tpu.memory_space<vmem>>, vector<8x128xf32>
    tpu.vector_store %arg16[%c0_131, %c0_132], %337 {strides = array<i32>} : memref<8x128xf32, #tpu.memory_space<vmem>>, vector<8x128xf32>,
    %c0_133 = arith.constant 0 : index
    %c0_134 = arith.constant 0 : index
    %c0_135 = arith.constant 0 : index
    %346 = vector.load %arg14[%c0_133, %c0_134, %c0_135] : memref<8x8x128xf32, #tpu.memory_space<vmem>>, vector<8x8x128xf32>
    %347 = vector.shape_cast %346 : vector<8x8x128xf32> to vector<64x128xf32>
    %348 = arith.truncf %347 : vector<64x128xf32> to vector<64x128xbf16>
    %c0_136 = arith.constant 0 : index
    %c0_137 = arith.constant 0 : index
    %349 = vector.load %arg8[%c0_136, %c0_137] : memref<128x128xbf16, #tpu.memory_space<vmem>>, vector<128x128xbf16>
    %cst_138 = arith.constant dense<0.000000e+00> : vector<64x128xf32>
    %350 = tpu.matmul %348, %349, %cst_138 {dimension_numbers = #tpu.dot_dimension_numbers<[1], [0], [0], [1], [0, 0, 1, 1], [], []>} : vector<64x128xbf16>, vector<128x128xbf16>, vector<64x128xf32> -> vector<64x128xf32>
    %c0_139 = arith.constant 0 : index
    %c0_140 = arith.constant 0 : index
    %351 = vector.load %arg9[%c0_139, %c0_140] : memref<1x128xf32, #tpu.memory_space<vmem>>, vector<1x128xf32>
    %352 = vector.broadcast %351 : vector<1x128xf32> to vector<64x128xf32>
    %353 = arith.addf %350, %352 : vector<64x128xf32>
    %354 = vector.shape_cast %353 : vector<64x128xf32> to vector<8x8x128xf32>
    %c0_141 = arith.constant 0 : index
    %c0_142 = arith.constant 0 : index
    %c0_143 = arith.constant 0 : index
    %355 = vector.load %arg10[%c0_141, %c0_142, %c0_143] : memref<8x8x128xf32, #tpu.memory_space<vmem>>, vector<8x8x128xf32>
    tpu.vector_store %arg10[%c0_141, %c0_142, %c0_143], %354 {strides = array<i32>} : memref<8x8x128xf32, #tpu.memory_space<vmem>>, vector<8x8x128xf32>,
    %c0_i32_144 = arith.constant 0 : i32
    %356 = arith.cmpi eq, %arg1, %c0_i32_144 : i32
    %357 = arith.extui %356 : i1 to i32
    %c0_i32_145 = arith.constant 0 : i32
    %358 = arith.cmpi ne, %357, %c0_i32_145 : i32
    scf.if %358 {
      %c0_146 = arith.constant 0 : index
      %c0_147 = arith.constant 0 : index
      %359 = vector.load %arg11[%c0_146, %c0_147] : memref<8x128xf32, #tpu.memory_space<vmem>>, vector<8x128xf32>
      tpu.vector_store %arg11[%c0_146, %c0_147], %339 {strides = array<i32>} : memref<8x128xf32, #tpu.memory_space<vmem>>, vector<8x128xf32>,
      %c0_148 = arith.constant 0 : index
      %c0_149 = arith.constant 0 : index
      %360 = vector.load %arg12[%c0_148, %c0_149] : memref<8x128xf32, #tpu.memory_space<vmem>>, vector<8x128xf32>
      tpu.vector_store %arg12[%c0_148, %c0_149], %337 {strides = array<i32>} : memref<8x128xf32, #tpu.memory_space<vmem>>, vector<8x128xf32>,
    } else {
    }
    return
  }
  func.func @transform_0(%arg0: i32, %arg1: i32) -> (i32, i32, i32) {
    %c0_i32 = arith.constant 0 : i32
    %c0_i32_0 = arith.constant 0 : i32
    return %arg1, %arg0, %c0_i32 : i32, i32, i32
  }
  func.func @transform_1(%arg0: i32, %arg1: i32) -> (i32, i32) {
    %c0_i32 = arith.constant 0 : i32
    %c0_i32_0 = arith.constant 0 : i32
    return %arg0, %c0_i32 : i32, i32
  }
  func.func @transform_2(%arg0: i32, %arg1: i32) -> (i32, i32) {
    %c0_i32 = arith.constant 0 : i32
    %c0_i32_0 = arith.constant 0 : i32
    return %arg0, %c0_i32 : i32, i32
  }
  func.func @transform_3(%arg0: i32, %arg1: i32) -> (i32, i32) {
    %c0_i32 = arith.constant 0 : i32
    %c0_i32_0 = arith.constant 0 : i32
    %c0_i32_1 = arith.constant 0 : i32
    return %c0_i32, %c0_i32_0 : i32, i32
  }
  func.func @transform_4(%arg0: i32, %arg1: i32) -> (i32, i32) {
    %c0_i32 = arith.constant 0 : i32
    %c0_i32_0 = arith.constant 0 : i32
    %c0_i32_1 = arith.constant 0 : i32
    return %c0_i32, %c0_i32_0 : i32, i32
  }
  func.func @transform_5(%arg0: i32, %arg1: i32) -> (i32, i32) {
    %c0_i32 = arith.constant 0 : i32
    %c0_i32_0 = arith.constant 0 : i32
    %c0_i32_1 = arith.constant 0 : i32
    return %c0_i32, %c0_i32_0 : i32, i32
  }
  func.func @transform_6(%arg0: i32, %arg1: i32) -> (i32, i32) {
    %c0_i32 = arith.constant 0 : i32
    %c0_i32_0 = arith.constant 0 : i32
    %c0_i32_1 = arith.constant 0 : i32
    return %c0_i32, %c0_i32_0 : i32, i32
  }
  func.func @transform_7(%arg0: i32, %arg1: i32) -> (i32, i32) {
    %c0_i32 = arith.constant 0 : i32
    %c0_i32_0 = arith.constant 0 : i32
    %c0_i32_1 = arith.constant 0 : i32
    return %c0_i32, %c0_i32_0 : i32, i32
  }
  func.func @transform_8(%arg0: i32, %arg1: i32) -> (i32, i32, i32) {
    %c0_i32 = arith.constant 0 : i32
    %c0_i32_0 = arith.constant 0 : i32
    return %arg1, %arg0, %c0_i32 : i32, i32, i32
  }
  func.func @transform_9(%arg0: i32, %arg1: i32) -> (i32, i32) {
    %c0_i32 = arith.constant 0 : i32
    %c0_i32_0 = arith.constant 0 : i32
    return %arg0, %c0_i32 : i32, i32
  }
  func.func @transform_10(%arg0: i32, %arg1: i32) -> (i32, i32) {
    %c0_i32 = arith.constant 0 : i32
    %c0_i32_0 = arith.constant 0 : i32
    return %arg0, %c0_i32 : i32, i32
  }
}

</mosaic_0001>

<bundles_post_ra>
// kernel: tpu_custom_call.1
= control target key start
LH: loop header
LB: loop body
LE: loop exit
PB: predicated region body
PF: predicated region fallthrough
CT: control target
= control target key end

     0   :  { %16 = vsyncpa [#allocation7], 0  ;;  %s2902_s0 = inlined_call_operand.hbm [shape: f32[8,8,16], index: 0, kind: input, shape index: {}]   ;;  %s2903_s1 = inlined_call_operand.hbm [shape: f32[8,128], index: 1, kind: input, shape index: {}]   ;;  %s2904_s2 = inlined_call_operand.hbm [shape: f32[8,128], index: 2, kind: input, shape index: {}]   ;;  %s2905_s3 = inlined_call_operand.hbm [shape: bf16[16,512], index: 3, kind: input, shape index: {}]   ;;  %s2906_s4 = inlined_call_operand.hbm [shape: bf16[128,512], index: 4, kind: input, shape index: {}]   ;;  %s2907_s5 = inlined_call_operand.vmem [shape: f32[1,512], index: 5, kind: input, shape index: {}]   ;;  %s2908_s6 = inlined_call_operand.hbm [shape: bf16[128,128], index: 6, kind: input, shape index: {}]   ;;  %s2909_s7 = inlined_call_operand.vmem [shape: f32[1,128], index: 7, kind: input, shape index: {}]   ;;  %s2910_s8 = inlined_call_operand.hbm [shape: f32[8,8,128], index: 8, kind: output, shape index: {0}]   ;;  %s2911_s9 = inlined_call_operand.hbm [shape: f32[8,128], index: 9, kind: output, shape index: {1}]   ;;  %s2912_s10 = inlined_call_operand.hbm [shape: f32[8,128], index: 10, kind: output, shape index: {2}]  }
   0x1   :  { %17 = vsyncpa [#allocation10], 0 }
   0x2   :  { %18 = vsyncpa [#allocation13], 0 }
   0x3   :  { %19 = vsyncpa [#allocation16], 0 }
   0x4   :  { %20 = vsyncpa [#allocation8], 0 }
   0x5   :  { %21 = vsyncpa [#allocation19], 0  ;;  %s2156_s13 = smov [#allocation9]   ;;  %s2157_s15 = smov [#allocation12]  }
   0x6   :  { %s40_s14 = sshll.u32 %s2156_s13, 4  ;;  %s59_s16 = sshll.u32 %s2157_s15, 4  ;;  %s41_s14 = int_to_ptr.vmem [resolvable:$true] %s40_s14  ;;  %s2227_s16 = int_to_ptr.vmem [resolvable:$true] %s59_s16 }
   0x7   :  { %s1946_s19 = scalar_lea.hbm %s2903_s1, 128 }
   0x8   :  { %p1947_p0 = scmp.ne.s32.totalorder %s2903_s1, %s1946_s19  ;;  %p1950_p1 = scmp.lt.u32.totalorder %s1946_s19, %s2903_s1 }
   0xa   :  { %p1952_p2 = pnand %p1950_p1, %p1947_p0 }
   0xc   :  { %1955 = shalt.err (!%p1952_p2)
}
   0xd   :  { %s1956_s24 = scalar_lea.vmem %s41_s14, 128  ;;  %p1961_p4 = scmp.lt.s32.totalorder %s41_s14, %s41_s14 }
   0xe   :  { %p1957_p3 = scmp.ne.s32.totalorder %s41_s14, %s1956_s24  ;;  %p1962_p5 = scmp.lt.s32.totalorder %s1956_s24, %s1956_s24 }
  0x10   :  { %p1963_p6 = por %p1962_p5, %p1961_p4 }
  0x12   :  { %p1964_p7 = pnand %p1963_p6, %p1957_p3 }
  0x14   :  { %1967 = shalt.err (!%p1964_p7)
}
  0x15   :  { %43 = dma.hbm_to_vmem [thread:$0]  %s2903_s1, 128, %s41_s14, [#allocation10]  }
  0x16   :  { %s1968_s29 = scalar_lea.hbm %s2905_s3, 512 }
  0x17   :  { %p1969_p8 = scmp.ne.s32.totalorder %s2905_s3, %s1968_s29  ;;  %p1972_p9 = scmp.lt.u32.totalorder %s1968_s29, %s2905_s3 }
  0x19   :  { %p1974_p10 = pnand %p1972_p9, %p1969_p8 }
  0x1b   :  { %1977 = shalt.err (!%p1974_p10)
}
  0x1c   :  { %s1978_s15 = scalar_lea.vmem %s2227_s16, 512  ;;  %p1983_p12 = scmp.lt.s32.totalorder %s2227_s16, %s2227_s16 }
  0x1d   :  { %p1979_p11 = scmp.ne.s32.totalorder %s2227_s16, %s1978_s15  ;;  %p1984_p13 = scmp.lt.s32.totalorder %s1978_s15, %s1978_s15 }
  0x1f   :  { %p1985_p0 = por %p1984_p13, %p1983_p12 }
  0x21   :  { %p1986_p1 = pnand %p1985_p0, %p1979_p11 }
  0x23   :  { %1989 = shalt.err (!%p1986_p1)
}
  0x24   :  { %s2158_s1 = smov 256   ;;  %s2159_s14 = smov 16  }
  0x25   :  { %65 = dma.hbm_to_vmem [thread:$0]  %s2905_s3, 512, %s2227_s16, [#allocation13], %s2158_s1, %s2158_s1, %s2159_s14  }
  0x26   :  { %s2160_s19 = smov [#allocation6]   ;;  %s1990_s23 = scalar_lea.hbm %s2902_s0, 1024 }
  0x27   :  { %s27_s20 = sshll.u32 %s2160_s19, 4  ;;  %p1991_p2 = scmp.ne.s32.totalorder %s2902_s0, %s1990_s23  ;;  %s28_s20 = int_to_ptr.vmem [resolvable:$true] %s27_s20 }
  0x28   :  { %p1994_p3 = scmp.lt.u32.totalorder %s1990_s23, %s2902_s0 }
  0x2a   :  { %p1996_p4 = pnand %p1994_p3, %p1991_p2 }
  0x2c   :  { %1999 = shalt.err (!%p1996_p4)
}
  0x2d   :  { %s2000_s28 = scalar_lea.vmem %s28_s20, 1024  ;;  %p2005_p6 = scmp.lt.s32.totalorder %s28_s20, %s28_s20 }
  0x2e   :  { %p2001_p5 = scmp.ne.s32.totalorder %s28_s20, %s2000_s28  ;;  %p2006_p7 = scmp.lt.s32.totalorder %s2000_s28, %s2000_s28 }
  0x30   :  { %p2007_p8 = por %p2006_p7, %p2005_p6 }
  0x32   :  { %p2008_p9 = pnand %p2007_p8, %p2001_p5 }
  0x34   :  { %2011 = shalt.err (!%p2008_p9)
}
  0x35   :  { %s2161_s3 = smov 128   ;;  %s2162_s16 = smov 8  }
  0x36   :  { %33 = dma.hbm_to_vmem [thread:$0]  %s2902_s0, 1024, %s28_s20, [#allocation7], %s2161_s3, %s2161_s3, %s2162_s16  }
  0x37   :  { %s2163_s11 = smov [#allocation11]   ;;  %s2164_s13 = smov [#allocation14]  }
  0x38   :  { %s50_s12 = sshll.u32 %s2163_s11, 4  ;;  %s71_s15 = sshll.u32 %s2164_s13, 4  ;;  %s51_s12 = int_to_ptr.vmem [resolvable:$true] %s50_s12  ;;  %s72_s15 = int_to_ptr.vmem [resolvable:$true] %s71_s15 }
  0x39   :  { %s2012_s19 = scalar_lea.hbm %s2904_s2, 128 }
  0x3a   :  { %p2013_p10 = scmp.ne.s32.totalorder %s2904_s2, %s2012_s19  ;;  %p2016_p11 = scmp.lt.u32.totalorder %s2012_s19, %s2904_s2 }
  0x3c   :  { %p2018_p12 = pnand %p2016_p11, %p2013_p10 }
  0x3e   :  { %2021 = shalt.err (!%p2018_p12)
}
  0x3f   :  { %s2022_s0 = scalar_lea.vmem %s51_s12, 128  ;;  %p2027_p0 = scmp.lt.s32.totalorder %s51_s12, %s51_s12 }
  0x40   :  { %p2023_p13 = scmp.ne.s32.totalorder %s51_s12, %s2022_s0  ;;  %p2028_p1 = scmp.lt.s32.totalorder %s2022_s0, %s2022_s0 }
  0x42   :  { %p2029_p2 = por %p2028_p1, %p2027_p0 }
  0x44   :  { %p2030_p3 = pnand %p2029_p2, %p2023_p13 }
  0x46   :  { %2033 = shalt.err (!%p2030_p3)
}
  0x47   :  { %53 = dma.hbm_to_vmem [thread:$0]  %s2904_s2, 128, %s51_s12, [#allocation10]  }
  0x48   :  { %s2034_s28 = scalar_lea.hbm %s2906_s4, 4096 }
  0x49   :  { %p2035_p4 = scmp.ne.s32.totalorder %s2906_s4, %s2034_s28  ;;  %p2038_p5 = scmp.lt.u32.totalorder %s2034_s28, %s2906_s4 }
  0x4b   :  { %p2040_p6 = pnand %p2038_p5, %p2035_p4 }
  0x4d   :  { %2043 = shalt.err (!%p2040_p6)
}
  0x4e   :  { %s2044_s17 = scalar_lea.vmem %s72_s15, 4096  ;;  %p2049_p8 = scmp.lt.s32.totalorder %s72_s15, %s72_s15 }
  0x4f   :  { %p2045_p7 = scmp.ne.s32.totalorder %s72_s15, %s2044_s17  ;;  %p2050_p9 = scmp.lt.s32.totalorder %s2044_s17, %s2044_s17 }
  0x51   :  { %p2051_p10 = por %p2050_p9, %p2049_p8 }
  0x53   :  { %p2052_p11 = pnand %p2051_p10, %p2045_p7 }
  0x55   :  { %2055 = shalt.err (!%p2052_p11)
}
  0x56   :  { %77 = dma.hbm_to_vmem [thread:$0]  %s2906_s4, 4096, %s72_s15, [#allocation13], %s2158_s1, %s2158_s1, %s2159_s14  }
  0x57   :  { %s2165_s18 = smov [#allocation15]   ;;  %s2056_s23 = scalar_lea.hbm %s2908_s6, 1024 }
  0x58   :  { %s85_s19 = sshll.u32 %s2165_s18, 4  ;;  %p2057_p12 = scmp.ne.s32.totalorder %s2908_s6, %s2056_s23  ;;  %s86_s19 = int_to_ptr.vmem [resolvable:$true] %s85_s19 }
  0x59   :  { %p2060_p13 = scmp.lt.u32.totalorder %s2056_s23, %s2908_s6 }
  0x5b   :  { %p2062_p0 = pnand %p2060_p13, %p2057_p12 }
  0x5d   :  { %2065 = shalt.err (!%p2062_p0)
}
  0x5e   :  { %s2066_s26 = scalar_lea.vmem %s86_s19, 1024  ;;  %p2071_p2 = scmp.lt.s32.totalorder %s86_s19, %s86_s19 }
  0x5f   :  { %p2067_p1 = scmp.ne.s32.totalorder %s86_s19, %s2066_s26  ;;  %p2072_p3 = scmp.lt.s32.totalorder %s2066_s26, %s2066_s26 }
  0x61   :  { %p2073_p4 = por %p2072_p3, %p2071_p2 }
  0x63   :  { %p2074_p5 = pnand %p2073_p4, %p2067_p1 }
  0x65   :  { %2077 = shalt.err (!%p2074_p5)
}
  0x66   :  { %s2166_s4 = smov 64   ;;  %s2167_s1 = smov 4  }
  0x67   :  { %91 = dma.hbm_to_vmem [thread:$0]  %s2908_s6, 1024, %s86_s19, [#allocation16], %s2166_s4, %s2166_s4, %s2167_s1  }
  0x68   :  { %2144 = dma.done.wait [#allocation7], 1024  }
  0x69   :  { %2145 = vsyncadd [#allocation7], 4294966272 }
  0x6a   :  { %2146 = dma.done.wait [#allocation10], 256  }
  0x6b   :  { %2147 = vsyncadd [#allocation10], 4294967040 }
  0x6c   :  { %2148 = dma.done.wait [#allocation13], 4608  }
  0x6d   :  { %2149 = vsyncadd [#allocation13], 4294962688 }
  0x6e   :  { %2150 = dma.done.wait [#allocation16], 1024  }
  0x6f   :  { %2151 = vsyncadd [#allocation16], 4294966272  ;;  %v2913_v0 = vmov 0   ;;  %v1773_v1 = vld [vmem:[#allocation12 + $0xc] ss:$16 sps:$4 sm:$0xff]   ;;  %v121_v3 = vld [vmem:[#allocation6] sm:$0xff]  ;;  %v139_v51 = vlaneseq }
  0x70   :  { %297 = vmatprep.mubr.bf16.mxu1 %v2913_v0  ;;  %224 = vmatprep.mubr.bf16.mxu0 %v2913_v0  ;;  %v1775_v2 = vld [vmem:[#allocation12 + $0x8] ss:$16 sps:$4 sm:$0xff]   ;;  %v2317_v6 = vld [vmem:[#allocation14 + $0x4] ss:$16 sps:$4 sm:$0xff]   ;;  %vm179_vm0 = vcmask 130048  }
  0x71   :  { %v122_v4 = vld [vmem:[#allocation6 + $0x8] sm:$0xff]  ;;  %265 = vmatprep.subr.bf16.mxu1 %v1773_v1  ;;  %v2319_v7 = vld [vmem:[#allocation14] ss:$16 sps:$4 sm:$0xff]   ;;  %v2322_v8 = vld [vmem:[#allocation14 + $0x24] ss:$16 sps:$4 sm:$0xff]   ;;  %v140_v52 = vshrl.u32 %v139_v51, 7 }
  0x72   :  { %v129_v5 = vpack.c.bf16 %v122_v4, %v121_v3  ;;  %266 = vmatpush1.bf16.msra.mxu1 %v1775_v2  ;;  %v2325_v9 = vld [vmem:[#allocation14 + $0x20] ss:$16 sps:$4 sm:$0xff]   ;;  %v124_v11 = vld [vmem:[#allocation6 + $0x18] sm:$0xff]  ;;  %v2330_v12 = vld [vmem:[#allocation14 + $0x44] ss:$16 sps:$4 sm:$0xff]  }
  0x73   :  { %569 = vmatprep.subr.bf16.mxu1 %v2317_v6  ;;  %v123_v10 = vld [vmem:[#allocation6 + $0x10] sm:$0xff]  ;;  %v125_v19 = vld [vmem:[#allocation6 + $0x20] sm:$0xff]  ;;  %v126_v20 = vld [vmem:[#allocation6 + $0x28] sm:$0xff]  ;;  %v149_v53 = vsub.s32 2, %v140_v52  ;;  %v153_v55 = vsub.s32 3, %v140_v52 }
  0x74   :  { %v130_v13 = vpack.c.bf16 %v124_v11, %v123_v10  ;;  %v2333_v14 = vld [vmem:[#allocation14 + $0x40] ss:$16 sps:$4 sm:$0xff]   ;;  %v2336_v15 = vld [vmem:[#allocation14 + $0x64] ss:$16 sps:$4 sm:$0xff]   ;;  %v131_v22 = vpack.c.bf16 %v126_v20, %v125_v19  ;;  %v128_v27 = vld [vmem:[#allocation6 + $0x38] sm:$0xff] }
  0x75   :  { %1676 = vmatmul.mubr.msk.bf16.vlgmr.msra.gmra.mrb[0].mxu1 %vm179_vm0, %v129_v5  ;;  %v2338_v16 = vld [vmem:[#allocation14 + $0x60] ss:$16 sps:$4 sm:$0xff]   ;;  %v1797_v17 = vld [vmem:[#allocation12 + $0x4] ss:$16 sps:$4 sm:$0xff]   ;;  %v2383_v34 = vld [vmem:[#allocation14 + $0xc] ss:$16 sps:$4 sm:$0xff]  }
  0x76   :  { %570 = vmatpush1.bf16.msra.mxu1 %v2319_v7  ;;  %307 = vmatprep.mubr.bf16.mxu1 %v2913_v0  ;;  %v1799_v18 = vld [vmem:[#allocation12] ss:$16 sps:$4 sm:$0xff]   ;;  %v2344_v21 = vld [vmem:[#allocation14 + $0x84] ss:$16 sps:$4 sm:$0xff]   ;;  %v2388_v36 = vld [vmem:[#allocation14 + $0x8] ss:$16 sps:$4 sm:$0xff]  }
  0x77   :  { %571 = vmatprep.subr.bf16.mxu1 %v2322_v8  ;;  %192 = vmatprep.subr.bf16.mxu0 %v1797_v17  ;;  %v2348_v23 = vld [vmem:[#allocation14 + $0x80] ss:$16 sps:$4 sm:$0xff]   ;;  %v2351_v24 = vld [vmem:[#allocation14 + $0xa4] ss:$16 sps:$4 sm:$0xff]   ;;  %v2391_v37 = vld [vmem:[#allocation14 + $0x2c] ss:$16 sps:$4 sm:$0xff]  }
  0x78   :  { %193 = vmatpush1.bf16.msra.mxu0 %v1799_v18  ;;  %v2357_v25 = vld [vmem:[#allocation14 + $0xa0] ss:$16 sps:$4 sm:$0xff]   ;;  %v2363_v28 = vld [vmem:[#allocation14 + $0xc4] ss:$16 sps:$4 sm:$0xff]   ;;  %v2398_v38 = vld [vmem:[#allocation14 + $0x28] ss:$16 sps:$4 sm:$0xff]  }
  0x79   :  { %680 = vmatprep.subr.bf16.mxu0 %v2317_v6  ;;  %v127_v26 = vld [vmem:[#allocation6 + $0x30] sm:$0xff]  ;;  %v117_v33 = vld [vmem:[#allocation9] sm:$0xff]  ;;  %v2402_v39 = vld [vmem:[#allocation14 + $0x4c] ss:$16 sps:$4 sm:$0xff]   ;;  %v145_v18 = vsub.s32 1, %v140_v52 }
  0x7a   :  { %572 = vmatpush1.bf16.msra.mxu1 %v2325_v9  ;;  %v132_v29 = vpack.c.bf16 %v128_v27, %v127_v26  ;;  %v2366_v30 = vld [vmem:[#allocation14 + $0xc0] ss:$16 sps:$4 sm:$0xff]   ;;  %v2370_v31 = vld [vmem:[#allocation14 + $0xe4] ss:$16 sps:$4 sm:$0xff]   ;;  %v408_v35 = vpack.c.bf16 %v117_v33, %v117_v33  ;;  %v2407_v40 = vld [vmem:[#allocation14 + $0x48] ss:$16 sps:$4 sm:$0xff]  }
  0x7b   :  { %573 = vmatprep.subr.bf16.mxu1 %v2330_v12  ;;  %1672 = vmatmul.mubr.msk.bf16.vlgmr.msra.gmra.mrb[0].mxu0 %vm179_vm0, %v129_v5  ;;  %v2374_v32 = vld [vmem:[#allocation14 + $0xe0] ss:$16 sps:$4 sm:$0xff]   ;;  %v2410_v41 = vld [vmem:[#allocation14 + $0x6c] ss:$16 sps:$4 sm:$0xff]   ;;  %v2417_v42 = vld [vmem:[#allocation14 + $0x68] ss:$16 sps:$4 sm:$0xff]  }
  0x7c   :  { %681 = vmatpush1.bf16.msra.mxu0 %v2319_v7  ;;  %234 = vmatprep.mubr.bf16.mxu0 %v2913_v0  ;;  %v2420_v43 = vld [vmem:[#allocation14 + $0x8c] ss:$16 sps:$4 sm:$0xff]   ;;  %v2425_v44 = vld [vmem:[#allocation14 + $0x88] ss:$16 sps:$4 sm:$0xff]   ;;  %v137_v54 = vld [vmem:[%s2907_s5] sm:$0xf] }
  0x7d   :  { %1677 = vmatmul.mubr.msk.bf16.gmra.mrb[4].mxu1 %vm179_vm0, %v130_v13  ;;  %682 = vmatprep.subr.bf16.mxu0 %v2322_v8  ;;  %v2428_v45 = vld [vmem:[#allocation14 + $0xac] ss:$16 sps:$4 sm:$0xff]   ;;  %v2431_v46 = vld [vmem:[#allocation14 + $0xa8] ss:$16 sps:$4 sm:$0xff]   ;;  %v2468_v56 = vrot.slane %v137_v54, %v149_v53  ;;  %v2474_v59 = vrot.slane %v137_v54, %v153_v55  ;;  %v146_v27 = vrot.slane %v137_v54, %v145_v18 }
  0x7e   :  { %574 = vmatpush1.bf16.msra.mxu1 %v2333_v14  ;;  %317 = vmatprep.mubr.bf16.mxu1 %v2913_v0  ;;  %v2434_v47 = vld [vmem:[#allocation14 + $0xcc] ss:$16 sps:$4 sm:$0xff]   ;;  %v2437_v48 = vld [vmem:[#allocation14 + $0xc8] ss:$16 sps:$4 sm:$0xff]  }
  0x7f   :  { %575 = vmatprep.subr.bf16.mxu1 %v2336_v15  ;;  %v2440_v49 = vld [vmem:[#allocation14 + $0xec] ss:$16 sps:$4 sm:$0xff]   ;;  %v2443_v50 = vld [vmem:[#allocation14 + $0xe8] ss:$16 sps:$4 sm:$0xff]  }
  0x80   :  { %683 = vmatpush1.bf16.msra.mxu0 %v2325_v9 }
  0x81   :  { %684 = vmatprep.subr.bf16.mxu0 %v2330_v12 }
  0x82   :  { %576 = vmatpush1.bf16.msra.mxu1 %v2338_v16 }
  0x83   :  { %577 = vmatprep.subr.bf16.mxu1 %v2344_v21  ;;  %1673 = vmatmul.mubr.msk.bf16.gmra.mrb[4].mxu0 %vm179_vm0, %v130_v13  ;;  %v141_v13 = vsub.s32 0, %v140_v52 }
  0x84   :  { %685 = vmatpush1.bf16.msra.mxu0 %v2333_v14  ;;  %244 = vmatprep.mubr.bf16.mxu0 %v2913_v0 }
  0x85   :  { %1678 = vmatmul.mubr.msk.bf16.gmra.mrb[8].mxu1 %vm179_vm0, %v131_v22  ;;  %686 = vmatprep.subr.bf16.mxu0 %v2336_v15  ;;  %v142_v20 = vrot.slane %v137_v54, %v141_v13 }
  0x86   :  { %578 = vmatpush1.bf16.msra.mxu1 %v2348_v23  ;;  %327 = vmatprep.mubr.bf16.mxu1 %v2913_v0 }
  0x87   :  { %579 = vmatprep.subr.bf16.mxu1 %v2351_v24 }
  0x88   :  { %687 = vmatpush1.bf16.msra.mxu0 %v2338_v16 }
  0x89   :  { %688 = vmatprep.subr.bf16.mxu0 %v2344_v21 }
  0x8a   :  { %580 = vmatpush1.bf16.msra.mxu1 %v2357_v25 }
  0x8b   :  { %581 = vmatprep.subr.bf16.mxu1 %v2363_v28  ;;  %1674 = vmatmul.mubr.msk.bf16.gmra.mrb[8].mxu0 %vm179_vm0, %v131_v22 }
  0x8c   :  { %689 = vmatpush1.bf16.msra.mxu0 %v2348_v23  ;;  %254 = vmatprep.mubr.bf16.mxu0 %v2913_v0 }
  0x8d   :  { %1679 = vmatmul.mubr.msk.bf16.gmra.mrb[12].mxu1 %vm179_vm0, %v132_v29  ;;  %690 = vmatprep.subr.bf16.mxu0 %v2351_v24 }
  0x8e   :  { %582 = vmatpush1.bf16.msra.mxu1 %v2366_v30  ;;  %601 = vmatprep.mubr.bf16.mxu1 %v2913_v0 }
  0x8f   :  { %583 = vmatprep.subr.bf16.mxu1 %v2370_v31 }
  0x90   :  { %691 = vmatpush1.bf16.msra.mxu0 %v2357_v25 }
  0x91   :  { %692 = vmatprep.subr.bf16.mxu0 %v2363_v28 }
  0x92   :  { %584 = vmatpush1.bf16.msra.mxu1 %v2374_v32 }
  0x93   :  { %610 = vmatprep.subr.bf16.mxu1 %v2383_v34  ;;  %1675 = vmatmul.mubr.msk.bf16.gmra.mrb[12].mxu0 %vm179_vm0, %v132_v29 }
  0x94   :  { %693 = vmatpush1.bf16.msra.mxu0 %v2366_v30  ;;  %712 = vmatprep.mubr.bf16.mxu0 %v2913_v0 }
  0x95   :  { %602 = vmatmul.mubr.bf16.vlgmr.msra.gmra.mrb[16].mxu1 %v408_v35  ;;  %694 = vmatprep.subr.bf16.mxu0 %v2370_v31 }
  0x96   :  { %611 = vmatpush1.bf16.msra.mxu1 %v2388_v36  ;;  %642 = vmatprep.mubr.bf16.mxu1 %v2913_v0 }
  0x97   :  { %612 = vmatprep.subr.bf16.mxu1 %v2391_v37 }
  0x98   :  { %695 = vmatpush1.bf16.msra.mxu0 %v2374_v32 }
  0x99   :  { %792 = vmatprep.subr.bf16.mxu0 %v2317_v6 }
  0x9a   :  { %613 = vmatpush1.bf16.msra.mxu1 %v2398_v38 }
  0x9b   :  { %614 = vmatprep.subr.bf16.mxu1 %v2402_v39 }
  0x9e   :  { %615 = vmatpush1.bf16.msra.mxu1 %v2407_v40 }
  0x9f   :  { %616 = vmatprep.subr.bf16.mxu1 %v2410_v41 }
  0xa2   :  { %617 = vmatpush1.bf16.msra.mxu1 %v2417_v42 }
  0xa3   :  { %618 = vmatprep.subr.bf16.mxu1 %v2420_v43 }
  0xa6   :  { %619 = vmatpush1.bf16.msra.mxu1 %v2425_v44 }
  0xa7   :  { %620 = vmatprep.subr.bf16.mxu1 %v2428_v45 }
  0xaa   :  { %621 = vmatpush1.bf16.msra.mxu1 %v2431_v46 }
  0xab   :  { %622 = vmatprep.subr.bf16.mxu1 %v2434_v47 }
  0xae   :  { %623 = vmatpush1.bf16.msra.mxu1 %v2437_v48 }
  0xaf   :  { %624 = vmatprep.subr.bf16.mxu1 %v2440_v49 }
  0xb2   :  { %625 = vmatpush1.bf16.msra.mxu1 %v2443_v50 }
  0xb3   :  { %721 = vmatprep.subr.bf16.mxu1 %v2383_v34 }
  0xb5   :  { %643 = vmatmul.mubr.bf16.vlgmr.msra.gmra.mrb[20].mxu1 %v408_v35 }
  0xb6   :  { %722 = vmatpush1.bf16.msra.mxu1 %v2388_v36  ;;  %753 = vmatprep.mubr.bf16.mxu1 %v2913_v0 }
  0xb7   :  { %723 = vmatprep.subr.bf16.mxu1 %v2391_v37 }
  0xba   :  { %724 = vmatpush1.bf16.msra.mxu1 %v2398_v38 }
  0xbb   :  { %725 = vmatprep.subr.bf16.mxu1 %v2402_v39 }
  0xbe   :  { %726 = vmatpush1.bf16.msra.mxu1 %v2407_v40 }
  0xbf   :  { %727 = vmatprep.subr.bf16.mxu1 %v2410_v41 }
  0xc2   :  { %728 = vmatpush1.bf16.msra.mxu1 %v2417_v42 }
  0xc3   :  { %729 = vmatprep.subr.bf16.mxu1 %v2420_v43 }
  0xc6   :  { %730 = vmatpush1.bf16.msra.mxu1 %v2425_v44 }
  0xc7   :  { %731 = vmatprep.subr.bf16.mxu1 %v2428_v45 }
  0xca   :  { %732 = vmatpush1.bf16.msra.mxu1 %v2431_v46 }
  0xcb   :  { %733 = vmatprep.subr.bf16.mxu1 %v2434_v47 }
  0xce   :  { %734 = vmatpush1.bf16.msra.mxu1 %v2437_v48 }
  0xcf   :  { %735 = vmatprep.subr.bf16.mxu1 %v2440_v49 }
  0xd2   :  { %736 = vmatpush1.bf16.msra.mxu1 %v2443_v50 }
  0xd3   :  { %833 = vmatprep.subr.bf16.mxu1 %v2383_v34 }
 0x148   :  { %v2470_v57 = vpop.f32.mrb[0].mxu1 }
 0x149   :  { %v2472_v58 = vpop.f32.mrb[1].mxu1 }
 0x14a   :  { %v303_v60 = vpop.f32.mrb[2].mxu1 }
 0x14b   :  { %v2477_v61 = vadd.f32 %v303_v60, %v2468_v56  ;;  %v305_v62 = vpop.f32.mrb[3].mxu1 }
 0x14c   :  { %v2480_v63 = vadd.f32 %v305_v62, %v2474_v59 }
 0x14e   :  { %v226_v19 = vpop.f32.mrb[0].mxu0 }
 0x14f   :  { %v228_v22 = vpop.f32.mrb[1].mxu0 }
 0x150   :  { %v309_v1 = vpop.f32.mrb[4].mxu1  ;;  %v230_v29 = vpop.f32.mrb[2].mxu0 }
 0x151   :  { %v2483_v2 = vadd.f32 %v309_v1, %v2468_v56  ;;  %v311_v3 = vpop.f32.mrb[5].mxu1  ;;  %v2497_v51 = vadd.f32 %v230_v29, %v142_v20  ;;  %v232_v53 = vpop.f32.mrb[3].mxu0 }
 0x152   :  { %v2486_v4 = vadd.f32 %v311_v3, %v2474_v59  ;;  %v313_v5 = vpop.f32.mrb[6].mxu1  ;;  %v2502_v62 = vadd.f32 %v232_v53, %v146_v27 }
 0x153   :  { %v2489_v10 = vadd.f32 %v313_v5, %v2468_v56  ;;  %v315_v11 = vpop.f32.mrb[7].mxu1 }
 0x154   :  { %2915 = vst [vmem:[#allocation27_spill] sm:$0xff] %v2486_v4  ;;  %v2492_v17 = vadd.f32 %v315_v11, %v2474_v59 }
 0x155   :  { %2916 = vst [vmem:[#allocation28_spill] sm:$0xff] %v2489_v10 }
 0x156   :  { %2917 = vst [vmem:[#allocation29_spill] sm:$0xff] %v2492_v17  ;;  %v236_v3 = vpop.f32.mrb[4].mxu0 }
 0x157   :  { %v2510_v5 = vadd.f32 %v236_v3, %v142_v20  ;;  %v238_v11 = vpop.f32.mrb[5].mxu0 }
 0x158   :  { %v319_v26 = vpop.f32.mrb[8].mxu1  ;;  %v2512_v18 = vadd.f32 %v238_v11, %v146_v27 }
 0x159   :  { %v2495_v33 = vadd.f32 %v319_v26, %v2468_v56  ;;  %v321_v35 = vpop.f32.mrb[9].mxu1  ;;  %v240_v26 = vpop.f32.mrb[6].mxu0 }
 0x15a   :  { %v2500_v55 = vadd.f32 %v321_v35, %v2474_v59  ;;  %v323_v60 = vpop.f32.mrb[10].mxu1  ;;  %v2517_v53 = vadd.f32 %v240_v26, %v142_v20 }
 0x15b   :  { %2918 = vst [vmem:[#allocation30_spill] sm:$0xff] %v2495_v33  ;;  %v2505_v52 = vadd.f32 %v323_v60, %v2468_v56  ;;  %v325_v1 = vpop.f32.mrb[11].mxu1  ;;  %v242_v60 = vpop.f32.mrb[7].mxu0 }
 0x15c   :  { %2919 = vst [vmem:[#allocation31_spill] sm:$0xff] %v2500_v55  ;;  %v2508_v54 = vadd.f32 %v325_v1, %v2474_v59  ;;  %2923 = vst [vmem:[#allocation35_spill] sm:$0xff] %v2517_v53  ;;  %v227_v55 = vadd.f32 %v226_v19, %v142_v20 }
 0x15d   :  { %2920 = vst [vmem:[#allocation32_spill] sm:$0xff] %v2505_v52 }
 0x15e   :  { %2921 = vst [vmem:[#allocation33_spill] sm:$0xff] %v2508_v54  ;;  %v2522_v54 = vadd.f32 %v242_v60, %v146_v27 }
 0x160   :  { %v329_v13 = vpop.f32.mrb[12].mxu1  ;;  %2925 = vst [vmem:[#allocation37_spill] sm:$0xff] %v2522_v54 }
 0x161   :  { %v2515_v29 = vadd.f32 %v329_v13, %v2468_v56  ;;  %v331_v35 = vpop.f32.mrb[13].mxu1  ;;  %v229_v13 = vadd.f32 %v228_v22, %v146_v27 }
 0x162   :  { %v2520_v0 = vadd.f32 %v331_v35, %v2474_v59  ;;  %v333_v1 = vpop.f32.mrb[14].mxu1 }
 0x163   :  { %2922 = vst [vmem:[#allocation34_spill] sm:$0xff] %v2515_v29  ;;  %v2525_v3 = vadd.f32 %v333_v1, %v2468_v56  ;;  %v335_v52 = vpop.f32.mrb[15].mxu1  ;;  %v246_v29 = vpop.f32.mrb[8].mxu0 }
 0x164   :  { %2924 = vst [vmem:[#allocation36_spill] sm:$0xff] %v2520_v0  ;;  %v2528_v11 = vadd.f32 %v335_v52, %v2474_v59  ;;  %v2530_v33 = vadd.f32 %v246_v29, %v142_v20  ;;  %v248_v26 = vpop.f32.mrb[9].mxu0 }
 0x165   :  { %2926 = vst [vmem:[#allocation38_spill] sm:$0xff] %v2525_v3  ;;  %v2532_v10 = vadd.f32 %v248_v26, %v146_v27  ;;  %v250_v35 = vpop.f32.mrb[10].mxu0 }
 0x166   :  { %2927 = vst [vmem:[#allocation39_spill] sm:$0xff] %v2528_v11  ;;  %2928 = vst [vmem:[#allocation40_spill] sm:$0xff] %v2530_v33  ;;  %v2534_v54 = vadd.f32 %v250_v35, %v142_v20  ;;  %v252_v1 = vpop.f32.mrb[11].mxu0 }
 0x167   :  { %2929 = vst [vmem:[#allocation41_spill] sm:$0xff] %v2532_v10  ;;  %v2536_v4 = vadd.f32 %v252_v1, %v146_v27  ;;  %v256_v19 = vpop.f32.mrb[12].mxu0 }
 0x168   :  { %v603_v17 = vpop.f32.mrb[16].mxu1  ;;  %v2538_v22 = vadd.f32 %v256_v19, %v142_v20  ;;  %v258_v29 = vpop.f32.mrb[13].mxu0 }
 0x169   :  { %v651_v0 = vadd.f32 %v603_v17, %v227_v55  ;;  %v605_v60 = vpop.f32.mrb[17].mxu1  ;;  %v2540_v11 = vadd.f32 %v258_v29, %v146_v27  ;;  %v260_v33 = vpop.f32.mrb[14].mxu0 }
 0x16a   :  { %v652_v3 = vadd.f32 %v605_v60, %v229_v13  ;;  %v607_v53 = vpop.f32.mrb[18].mxu1  ;;  %v2542_v26 = vadd.f32 %v260_v33, %v142_v20  ;;  %v262_v10 = vpop.f32.mrb[15].mxu0  ;;  %v302_v13 = vadd.f32 %v2472_v58, %v2474_v59 }
 0x16b   :  { %v608_v52 = vpop.f32.mrb[19].mxu1  ;;  %v2544_v17 = vadd.f32 %v262_v10, %v146_v27  ;;  %v655_v35 = vmul.f32 0.5, %v651_v0  ;;  %v300_v53 = vadd.f32 %v2470_v57, %v2468_v56 }
 0x16c   :  { %2930 = vst [vmem:[#allocation42_spill] sm:$0xff] %v2542_v26  ;;  %v659_v55 = vmul.f32 0.5, %v652_v3 }
 0x16d   :  { %2931 = vst [vmem:[#allocation43_spill] sm:$0xff] %v2544_v17 }
 0x16e   :  { %1835 = vtanh.f32 %v659_v55 }
 0x16f   :  { %1837 = vtanh.f32 %v655_v35  ;;  %v119_v35 = vld [vmem:[#allocation11] sm:$0xff] }
 0x178   :  { %v1836_v20 = vpop.eup %1835 }
 0x179   :  { %v1838_v10 = vpop.eup %1837  ;;  %v661_v27 = vmul.f32 0.5, %v1836_v20 }
 0x17a   :  { %v657_v0 = vmul.f32 0.5, %v1838_v10 }
 0x17b   :  { %v662_v55 = vadd.f32 0.5, %v661_v27 }
 0x17c   :  { %v658_v17 = vadd.f32 0.5, %v657_v0 }
 0x17d   :  { %v668_v57 = vmul.f32 %v662_v55, %v119_v35 }
 0x188   :  { %v644_v60 = vpop.f32.mrb[20].mxu1 }
 0x189   :  { %v653_v1 = vadd.f32 %v644_v60, %v300_v53  ;;  %v646_v52 = vpop.f32.mrb[21].mxu1 }
 0x18a   :  { %v654_v19 = vadd.f32 %v646_v52, %v302_v13  ;;  %v648_v29 = vpop.f32.mrb[22].mxu1 }
 0x18b   :  { %1839 = vtanh.f32 %v653_v1  ;;  %v649_v33 = vpop.f32.mrb[23].mxu1 }
 0x18c   :  { %v664_v3 = vmul.f32 0.5, %v654_v19 }
 0x18e   :  { %1841 = vtanh.f32 %v664_v3 }
 0x195   :  { %v1840_v56 = vpop.eup %1839 }
 0x196   :  { %v669_v26 = vmul.f32 %v1840_v56, %v658_v17 }
 0x198   :  { %v2550_v58 = vadd.f32 %v669_v26, %v668_v57  ;;  %v1842_v59 = vpop.eup %1841  ;;  %v2932_v26 = vmov 0  }
 0x199   :  { %v666_v53 = vmul.f32 0.5, %v1842_v59 }
 0x19a   :  { %1843 = vtanh.f32 %v2550_v58 }
 0x19b   :  { %v667_v13 = vadd.f32 0.5, %v666_v53 }
 0x1a4   :  { %v1844_v60 = vpop.eup %1843 }
 0x1a5   :  { %v2553_v1 = vmul.f32 %v1844_v60, %v667_v13 }
 0x1a7   :  { %v679_v52 = vpack.c.bf16 %v2553_v1, %v2553_v1 }
 0x1a9   :  { %713 = vmatmul.mubr.bf16.vlgmr.msra.gmra.mrb[16].mxu0 %v679_v52  ;;  %754 = vmatmul.mubr.bf16.vlgmr.msra.gmra.mrb[24].mxu1 %v679_v52 }
 0x1aa   :  { %793 = vmatpush1.bf16.msra.mxu0 %v2319_v7  ;;  %834 = vmatpush1.bf16.msra.mxu1 %v2388_v36 }
 0x1ab   :  { %794 = vmatprep.subr.bf16.mxu0 %v2322_v8  ;;  %835 = vmatprep.subr.bf16.mxu1 %v2391_v37 }
 0x1ac   :  { %824 = vmatprep.mubr.bf16.mxu0 %v2932_v26  ;;  %865 = vmatprep.mubr.bf16.mxu1 %v2932_v26 }
 0x1ae   :  { %795 = vmatpush1.bf16.msra.mxu0 %v2325_v9  ;;  %836 = vmatpush1.bf16.msra.mxu1 %v2398_v38 }
 0x1af   :  { %796 = vmatprep.subr.bf16.mxu0 %v2330_v12  ;;  %837 = vmatprep.subr.bf16.mxu1 %v2402_v39 }
 0x1b2   :  { %797 = vmatpush1.bf16.msra.mxu0 %v2333_v14  ;;  %838 = vmatpush1.bf16.msra.mxu1 %v2407_v40 }
 0x1b3   :  { %798 = vmatprep.subr.bf16.mxu0 %v2336_v15  ;;  %839 = vmatprep.subr.bf16.mxu1 %v2410_v41 }
 0x1b6   :  { %799 = vmatpush1.bf16.msra.mxu0 %v2338_v16  ;;  %840 = vmatpush1.bf16.msra.mxu1 %v2417_v42 }
 0x1b7   :  { %800 = vmatprep.subr.bf16.mxu0 %v2344_v21  ;;  %841 = vmatprep.subr.bf16.mxu1 %v2420_v43 }
 0x1ba   :  { %801 = vmatpush1.bf16.msra.mxu0 %v2348_v23  ;;  %842 = vmatpush1.bf16.msra.mxu1 %v2425_v44 }
 0x1bb   :  { %802 = vmatprep.subr.bf16.mxu0 %v2351_v24  ;;  %843 = vmatprep.subr.bf16.mxu1 %v2428_v45 }
 0x1be   :  { %803 = vmatpush1.bf16.msra.mxu0 %v2357_v25  ;;  %844 = vmatpush1.bf16.msra.mxu1 %v2431_v46 }
 0x1bf   :  { %804 = vmatprep.subr.bf16.mxu0 %v2363_v28  ;;  %845 = vmatprep.subr.bf16.mxu1 %v2434_v47 }
 0x1c2   :  { %805 = vmatpush1.bf16.msra.mxu0 %v2366_v30  ;;  %846 = vmatpush1.bf16.msra.mxu1 %v2437_v48 }
 0x1c3   :  { %806 = vmatprep.subr.bf16.mxu0 %v2370_v31  ;;  %847 = vmatprep.subr.bf16.mxu1 %v2440_v49 }
 0x1c6   :  { %807 = vmatpush1.bf16.msra.mxu0 %v2374_v32  ;;  %848 = vmatpush1.bf16.msra.mxu1 %v2443_v50 }
 0x1c7   :  { %904 = vmatprep.subr.bf16.mxu0 %v2317_v6  ;;  %945 = vmatprep.subr.bf16.mxu1 %v2383_v34 }
 0x27c   :  { %v714_v17 = vpop.f32.mrb[16].mxu0  ;;  %v755_v19 = vpop.f32.mrb[24].mxu1 }
 0x27d   :  { %v762_v29 = vadd.f32 %v714_v17, %v2497_v51  ;;  %v764_v20 = vadd.f32 %v755_v19, %v2477_v61  ;;  %v716_v33 = vpop.f32.mrb[17].mxu0  ;;  %v757_v10 = vpop.f32.mrb[25].mxu1 }
 0x27e   :  { %v763_v27 = vadd.f32 %v716_v33, %v2502_v62  ;;  %v765_v3 = vadd.f32 %v757_v10, %v2480_v63  ;;  %v718_v0 = vpop.f32.mrb[18].mxu0  ;;  %v759_v55 = vpop.f32.mrb[26].mxu1 }
 0x27f   :  { %v766_v35 = vmul.f32 0.5, %v762_v29  ;;  %v719_v56 = vpop.f32.mrb[19].mxu0  ;;  %v760_v57 = vpop.f32.mrb[27].mxu1 }
 0x280   :  { %v770_v59 = vmul.f32 0.5, %v763_v27  ;;  %v775_v53 = vmul.f32 0.5, %v765_v3 }
 0x281   :  { %1845 = vtanh.f32 %v766_v35 }
 0x282   :  { %1847 = vtanh.f32 %v770_v59 }
 0x283   :  { %1849 = vtanh.f32 %v764_v20 }
 0x284   :  { %1851 = vtanh.f32 %v775_v53 }
 0x28b   :  { %v1846_v13 = vpop.eup %1845 }
 0x28c   :  { %v1848_v51 = vpop.eup %1847  ;;  %v768_v60 = vmul.f32 0.5, %v1846_v13  ;;  %v2933_v13 = vld [vmem:[#allocation27_spill] sm:$0xff] }
 0x28d   :  { %v772_v61 = vmul.f32 0.5, %v1848_v51  ;;  %v1850_v17 = vpop.eup %1849 }
 0x28e   :  { %v769_v52 = vadd.f32 0.5, %v768_v60  ;;  %v1852_v29 = vpop.eup %1851 }
 0x28f   :  { %v773_v62 = vadd.f32 0.5, %v772_v61  ;;  %v777_v10 = vmul.f32 0.5, %v1852_v29 }
 0x290   :  { %v780_v19 = vmul.f32 %v1850_v17, %v769_v52 }
 0x291   :  { %v779_v63 = vmul.f32 %v773_v62, %v2550_v58  ;;  %v778_v27 = vadd.f32 0.5, %v777_v10 }
 0x293   :  { %v2596_v33 = vadd.f32 %v780_v19, %v779_v63 }
 0x295   :  { %1853 = vtanh.f32 %v2596_v33 }
 0x29f   :  { %v1854_v20 = vpop.eup %1853 }
 0x2a0   :  { %v2599_v3 = vmul.f32 %v1854_v20, %v778_v27 }
 0x2a2   :  { %v791_v0 = vpack.c.bf16 %v2599_v3, %v2599_v3 }
 0x2a4   :  { %825 = vmatmul.mubr.bf16.vlgmr.msra.gmra.mrb[20].mxu0 %v791_v0  ;;  %866 = vmatmul.mubr.bf16.vlgmr.msra.gmra.mrb[28].mxu1 %v791_v0 }
 0x2a5   :  { %905 = vmatpush1.bf16.msra.mxu0 %v2319_v7  ;;  %946 = vmatpush1.bf16.msra.mxu1 %v2388_v36 }
 0x2a6   :  { %906 = vmatprep.subr.bf16.mxu0 %v2322_v8  ;;  %947 = vmatprep.subr.bf16.mxu1 %v2391_v37 }
 0x2a7   :  { %936 = vmatprep.mubr.bf16.mxu0 %v2932_v26  ;;  %977 = vmatprep.mubr.bf16.mxu1 %v2932_v26 }
 0x2a9   :  { %907 = vmatpush1.bf16.msra.mxu0 %v2325_v9  ;;  %948 = vmatpush1.bf16.msra.mxu1 %v2398_v38 }
 0x2aa   :  { %908 = vmatprep.subr.bf16.mxu0 %v2330_v12  ;;  %949 = vmatprep.subr.bf16.mxu1 %v2402_v39 }
 0x2ad   :  { %909 = vmatpush1.bf16.msra.mxu0 %v2333_v14  ;;  %950 = vmatpush1.bf16.msra.mxu1 %v2407_v40 }
 0x2ae   :  { %910 = vmatprep.subr.bf16.mxu0 %v2336_v15  ;;  %951 = vmatprep.subr.bf16.mxu1 %v2410_v41 }
 0x2b1   :  { %911 = vmatpush1.bf16.msra.mxu0 %v2338_v16  ;;  %952 = vmatpush1.bf16.msra.mxu1 %v2417_v42 }
 0x2b2   :  { %912 = vmatprep.subr.bf16.mxu0 %v2344_v21  ;;  %953 = vmatprep.subr.bf16.mxu1 %v2420_v43 }
 0x2b5   :  { %913 = vmatpush1.bf16.msra.mxu0 %v2348_v23  ;;  %954 = vmatpush1.bf16.msra.mxu1 %v2425_v44 }
 0x2b6   :  { %914 = vmatprep.subr.bf16.mxu0 %v2351_v24  ;;  %955 = vmatprep.subr.bf16.mxu1 %v2428_v45 }
 0x2b9   :  { %915 = vmatpush1.bf16.msra.mxu0 %v2357_v25  ;;  %956 = vmatpush1.bf16.msra.mxu1 %v2431_v46 }
 0x2ba   :  { %916 = vmatprep.subr.bf16.mxu0 %v2363_v28  ;;  %957 = vmatprep.subr.bf16.mxu1 %v2434_v47 }
 0x2bd   :  { %917 = vmatpush1.bf16.msra.mxu0 %v2366_v30  ;;  %958 = vmatpush1.bf16.msra.mxu1 %v2437_v48 }
 0x2be   :  { %918 = vmatprep.subr.bf16.mxu0 %v2370_v31  ;;  %959 = vmatprep.subr.bf16.mxu1 %v2440_v49 }
 0x2c1   :  { %919 = vmatpush1.bf16.msra.mxu0 %v2374_v32  ;;  %960 = vmatpush1.bf16.msra.mxu1 %v2443_v50 }
 0x2c2   :  { %1016 = vmatprep.subr.bf16.mxu0 %v2317_v6  ;;  %1057 = vmatprep.subr.bf16.mxu1 %v2383_v34 }
 0x377   :  { %v826_v58 = vpop.f32.mrb[20].mxu0  ;;  %v867_v55 = vpop.f32.mrb[28].mxu1 }
 0x378   :  { %v874_v35 = vadd.f32 %v826_v58, %v2510_v5  ;;  %v876_v56 = vadd.f32 %v867_v55, %v2483_v2  ;;  %v828_v57 = vpop.f32.mrb[21].mxu0  ;;  %v869_v59 = vpop.f32.mrb[29].mxu1 }
 0x379   :  { %v875_v53 = vadd.f32 %v828_v57, %v2512_v18  ;;  %v877_v51 = vadd.f32 %v869_v59, %v2933_v13  ;;  %v830_v60 = vpop.f32.mrb[22].mxu0  ;;  %v871_v61 = vpop.f32.mrb[30].mxu1 }
 0x37a   :  { %v878_v52 = vmul.f32 0.5, %v874_v35  ;;  %v831_v17 = vpop.f32.mrb[23].mxu0  ;;  %v872_v62 = vpop.f32.mrb[31].mxu1  ;;  %v2934_v60 = vld [vmem:[#allocation35_spill] sm:$0xff] }
 0x37b   :  { %v882_v19 = vmul.f32 0.5, %v875_v53  ;;  %v887_v63 = vmul.f32 0.5, %v877_v51 }
 0x37c   :  { %1855 = vtanh.f32 %v878_v52  ;;  %v2935_v52 = vld [vmem:[#allocation28_spill] sm:$0xff] }
 0x37d   :  { %1857 = vtanh.f32 %v882_v19 }
 0x37e   :  { %1859 = vtanh.f32 %v876_v56 }
 0x37f   :  { %1861 = vtanh.f32 %v887_v63  ;;  %v2936_v63 = vld [vmem:[#allocation37_spill] sm:$0xff] }
 0x386   :  { %v1856_v29 = vpop.eup %1855 }
 0x387   :  { %v1858_v5 = vpop.eup %1857  ;;  %v880_v10 = vmul.f32 0.5, %v1856_v29 }
 0x388   :  { %v884_v2 = vmul.f32 0.5, %v1858_v5  ;;  %v1860_v20 = vpop.eup %1859  ;;  %v2937_v5 = vld [vmem:[#allocation29_spill] sm:$0xff] }
 0x389   :  { %v881_v27 = vadd.f32 0.5, %v880_v10  ;;  %v1862_v35 = vpop.eup %1861 }
 0x38a   :  { %v885_v18 = vadd.f32 0.5, %v884_v2  ;;  %v889_v57 = vmul.f32 0.5, %v1862_v35 }
 0x38b   :  { %v892_v0 = vmul.f32 %v1860_v20, %v881_v27 }
 0x38c   :  { %v891_v58 = vmul.f32 %v885_v18, %v2596_v33  ;;  %v890_v59 = vadd.f32 0.5, %v889_v57 }
 0x38e   :  { %v2642_v55 = vadd.f32 %v892_v0, %v891_v58 }
 0x390   :  { %1863 = vtanh.f32 %v2642_v55 }
 0x39a   :  { %v1864_v56 = vpop.eup %1863 }
 0x39b   :  { %v2645_v53 = vmul.f32 %v1864_v56, %v890_v59 }
 0x39d   :  { %v903_v13 = vpack.c.bf16 %v2645_v53, %v2645_v53 }
 0x39f   :  { %937 = vmatmul.mubr.bf16.vlgmr.msra.gmra.mrb[24].mxu0 %v903_v13  ;;  %978 = vmatmul.mubr.bf16.vlgmr.msra.gmra.mrb[32].mxu1 %v903_v13 }
 0x3a0   :  { %1017 = vmatpush1.bf16.msra.mxu0 %v2319_v7  ;;  %1058 = vmatpush1.bf16.msra.mxu1 %v2388_v36 }
 0x3a1   :  { %1018 = vmatprep.subr.bf16.mxu0 %v2322_v8  ;;  %1059 = vmatprep.subr.bf16.mxu1 %v2391_v37 }
 0x3a2   :  { %1048 = vmatprep.mubr.bf16.mxu0 %v2932_v26  ;;  %1089 = vmatprep.mubr.bf16.mxu1 %v2932_v26 }
 0x3a4   :  { %1019 = vmatpush1.bf16.msra.mxu0 %v2325_v9  ;;  %1060 = vmatpush1.bf16.msra.mxu1 %v2398_v38 }
 0x3a5   :  { %1020 = vmatprep.subr.bf16.mxu0 %v2330_v12  ;;  %1061 = vmatprep.subr.bf16.mxu1 %v2402_v39 }
 0x3a8   :  { %1021 = vmatpush1.bf16.msra.mxu0 %v2333_v14  ;;  %1062 = vmatpush1.bf16.msra.mxu1 %v2407_v40 }
 0x3a9   :  { %1022 = vmatprep.subr.bf16.mxu0 %v2336_v15  ;;  %1063 = vmatprep.subr.bf16.mxu1 %v2410_v41 }
 0x3ac   :  { %1023 = vmatpush1.bf16.msra.mxu0 %v2338_v16  ;;  %1064 = vmatpush1.bf16.msra.mxu1 %v2417_v42 }
 0x3ad   :  { %1024 = vmatprep.subr.bf16.mxu0 %v2344_v21  ;;  %1065 = vmatprep.subr.bf16.mxu1 %v2420_v43 }
 0x3b0   :  { %1025 = vmatpush1.bf16.msra.mxu0 %v2348_v23  ;;  %1066 = vmatpush1.bf16.msra.mxu1 %v2425_v44 }
 0x3b1   :  { %1026 = vmatprep.subr.bf16.mxu0 %v2351_v24  ;;  %1067 = vmatprep.subr.bf16.mxu1 %v2428_v45 }
 0x3b4   :  { %1027 = vmatpush1.bf16.msra.mxu0 %v2357_v25  ;;  %1068 = vmatpush1.bf16.msra.mxu1 %v2431_v46 }
 0x3b5   :  { %1028 = vmatprep.subr.bf16.mxu0 %v2363_v28  ;;  %1069 = vmatprep.subr.bf16.mxu1 %v2434_v47 }
 0x3b8   :  { %1029 = vmatpush1.bf16.msra.mxu0 %v2366_v30  ;;  %1070 = vmatpush1.bf16.msra.mxu1 %v2437_v48 }
 0x3b9   :  { %1030 = vmatprep.subr.bf16.mxu0 %v2370_v31  ;;  %1071 = vmatprep.subr.bf16.mxu1 %v2440_v49 }
 0x3bc   :  { %1031 = vmatpush1.bf16.msra.mxu0 %v2374_v32  ;;  %1072 = vmatpush1.bf16.msra.mxu1 %v2443_v50 }
 0x3bd   :  { %1128 = vmatprep.subr.bf16.mxu0 %v2317_v6  ;;  %1169 = vmatprep.subr.bf16.mxu1 %v2383_v34 }
 0x472   :  { %v938_v33 = vpop.f32.mrb[24].mxu0  ;;  %v979_v51 = vpop.f32.mrb[32].mxu1 }
 0x473   :  { %v986_v61 = vadd.f32 %v938_v33, %v2934_v60  ;;  %v988_v17 = vadd.f32 %v979_v51, %v2935_v52  ;;  %v940_v62 = vpop.f32.mrb[25].mxu0  ;;  %v981_v19 = vpop.f32.mrb[33].mxu1 }
 0x474   :  { %v987_v29 = vadd.f32 %v940_v62, %v2936_v63  ;;  %v989_v10 = vadd.f32 %v981_v19, %v2937_v5  ;;  %v942_v2 = vpop.f32.mrb[26].mxu0  ;;  %v983_v27 = vpop.f32.mrb[34].mxu1 }
 0x475   :  { %v990_v20 = vmul.f32 0.5, %v986_v61  ;;  %v943_v18 = vpop.f32.mrb[27].mxu0  ;;  %v984_v0 = vpop.f32.mrb[35].mxu1 }
 0x476   :  { %v994_v6 = vmul.f32 0.5, %v987_v29  ;;  %v999_v58 = vmul.f32 0.5, %v989_v10 }
 0x477   :  { %1865 = vtanh.f32 %v990_v20 }
 0x478   :  { %1867 = vtanh.f32 %v994_v6 }
 0x479   :  { %1869 = vtanh.f32 %v988_v17 }
 0x47a   :  { %1871 = vtanh.f32 %v999_v58 }
 0x481   :  { %v1866_v35 = vpop.eup %1865 }
 0x482   :  { %v1868_v57 = vpop.eup %1867  ;;  %v992_v59 = vmul.f32 0.5, %v1866_v35 }
 0x483   :  { %v996_v56 = vmul.f32 0.5, %v1868_v57  ;;  %v1870_v33 = vpop.eup %1869 }
 0x484   :  { %v993_v13 = vadd.f32 0.5, %v992_v59  ;;  %v1872_v61 = vpop.eup %1871 }
 0x485   :  { %v997_v51 = vadd.f32 0.5, %v996_v56  ;;  %v1001_v19 = vmul.f32 0.5, %v1872_v61 }
 0x486   :  { %v1004_v60 = vmul.f32 %v1870_v33, %v993_v13 }
 0x487   :  { %v1003_v52 = vmul.f32 %v997_v51, %v2642_v55  ;;  %v1002_v63 = vadd.f32 0.5, %v1001_v19 }
 0x489   :  { %v2688_v62 = vadd.f32 %v1004_v60, %v1003_v52 }
 0x48b   :  { %1873 = vtanh.f32 %v2688_v62 }
 0x495   :  { %v1874_v17 = vpop.eup %1873 }
 0x496   :  { %v2691_v29 = vmul.f32 %v1874_v17, %v1002_v63  ;;  %v2743_v17 = vld [vmem:[#allocation14] ss:$16 sps:$4 sm:$0xff]  }
 0x498   :  { %v1015_v5 = vpack.c.bf16 %v2691_v29, %v2691_v29 }
 0x49a   :  { %1049 = vmatmul.mubr.bf16.vlgmr.msra.gmra.mrb[28].mxu0 %v1015_v5  ;;  %1090 = vmatmul.mubr.bf16.vlgmr.msra.gmra.mrb[36].mxu1 %v1015_v5  ;;  %v2753_v5 = vld [vmem:[#allocation14 + $0x20] ss:$16 sps:$4 sm:$0xff]  }
 0x49b   :  { %1129 = vmatpush1.bf16.msra.mxu0 %v2319_v7  ;;  %1170 = vmatpush1.bf16.msra.mxu1 %v2388_v36  ;;  %v2727_v7 = vld [vmem:[#allocation14 + $0x4] ss:$16 sps:$4 sm:$0xff]  }
 0x49c   :  { %1130 = vmatprep.subr.bf16.mxu0 %v2322_v8  ;;  %1171 = vmatprep.subr.bf16.mxu1 %v2391_v37 }
 0x49d   :  { %1160 = vmatprep.mubr.bf16.mxu0 %v2932_v26  ;;  %1201 = vmatprep.mubr.bf16.mxu1 %v2932_v26 }
 0x49f   :  { %1131 = vmatpush1.bf16.msra.mxu0 %v2325_v9  ;;  %1172 = vmatpush1.bf16.msra.mxu1 %v2398_v38 }
 0x4a0   :  { %1132 = vmatprep.subr.bf16.mxu0 %v2330_v12  ;;  %1173 = vmatprep.subr.bf16.mxu1 %v2402_v39  ;;  %v2938_v12 = vld [vmem:[#allocation40_spill] sm:$0xff] }
 0x4a3   :  { %1133 = vmatpush1.bf16.msra.mxu0 %v2333_v14  ;;  %1174 = vmatpush1.bf16.msra.mxu1 %v2407_v40 }
 0x4a4   :  { %1134 = vmatprep.subr.bf16.mxu0 %v2336_v15  ;;  %1175 = vmatprep.subr.bf16.mxu1 %v2410_v41  ;;  %v2939_v15 = vld [vmem:[#allocation30_spill] sm:$0xff] }
 0x4a7   :  { %1135 = vmatpush1.bf16.msra.mxu0 %v2338_v16  ;;  %1176 = vmatpush1.bf16.msra.mxu1 %v2417_v42 }
 0x4a8   :  { %1136 = vmatprep.subr.bf16.mxu0 %v2344_v21  ;;  %1177 = vmatprep.subr.bf16.mxu1 %v2420_v43 }
 0x4ab   :  { %1137 = vmatpush1.bf16.msra.mxu0 %v2348_v23  ;;  %1178 = vmatpush1.bf16.msra.mxu1 %v2425_v44 }
 0x4ac   :  { %1138 = vmatprep.subr.bf16.mxu0 %v2351_v24  ;;  %1179 = vmatprep.subr.bf16.mxu1 %v2428_v45  ;;  %v2940_v24 = vld [vmem:[#allocation41_spill] sm:$0xff] }
 0x4af   :  { %1139 = vmatpush1.bf16.msra.mxu0 %v2357_v25  ;;  %1180 = vmatpush1.bf16.msra.mxu1 %v2431_v46 }
 0x4b0   :  { %1140 = vmatprep.subr.bf16.mxu0 %v2363_v28  ;;  %1181 = vmatprep.subr.bf16.mxu1 %v2434_v47  ;;  %v2941_v28 = vld [vmem:[#allocation31_spill] sm:$0xff] }
 0x4b3   :  { %1141 = vmatpush1.bf16.msra.mxu0 %v2366_v30  ;;  %1182 = vmatpush1.bf16.msra.mxu1 %v2437_v48 }
 0x4b4   :  { %1142 = vmatprep.subr.bf16.mxu0 %v2370_v31  ;;  %1183 = vmatprep.subr.bf16.mxu1 %v2440_v49 }
 0x4b7   :  { %1143 = vmatpush1.bf16.msra.mxu0 %v2374_v32  ;;  %1184 = vmatpush1.bf16.msra.mxu1 %v2443_v50 }
 0x4b8   :  { %1240 = vmatprep.subr.bf16.mxu0 %v2727_v7  ;;  %1281 = vmatprep.subr.bf16.mxu1 %v2383_v34 }
 0x56d   :  { %v1050_v8 = vpop.f32.mrb[28].mxu0  ;;  %v1091_v9 = vpop.f32.mrb[36].mxu1 }
 0x56e   :  { %v1098_v14 = vadd.f32 %v1050_v8, %v2938_v12  ;;  %v1100_v16 = vadd.f32 %v1091_v9, %v2939_v15  ;;  %v1052_v21 = vpop.f32.mrb[29].mxu0  ;;  %v1093_v23 = vpop.f32.mrb[37].mxu1  ;;  %v2757_v8 = vld [vmem:[#allocation14 + $0x44] ss:$16 sps:$4 sm:$0xff]   ;;  %v2769_v9 = vld [vmem:[#allocation14 + $0x60] ss:$16 sps:$4 sm:$0xff]  }
 0x56f   :  { %v1099_v25 = vadd.f32 %v1052_v21, %v2940_v24  ;;  %v1101_v30 = vadd.f32 %v1093_v23, %v2941_v28  ;;  %v1054_v31 = vpop.f32.mrb[30].mxu0  ;;  %v1095_v32 = vpop.f32.mrb[38].mxu1  ;;  %v2942_v12 = vld [vmem:[#allocation32_spill] sm:$0xff]  ;;  %v2943_v21 = vld [vmem:[#allocation33_spill] sm:$0xff] }
 0x570   :  { %v1102_v55 = vmul.f32 0.5, %v1098_v14  ;;  %v1055_v10 = vpop.f32.mrb[31].mxu0  ;;  %v1096_v2 = vpop.f32.mrb[39].mxu1 }
 0x571   :  { %v1106_v27 = vmul.f32 0.5, %v1099_v25  ;;  %v1111_v20 = vmul.f32 0.5, %v1101_v30 }
 0x572   :  { %1875 = vtanh.f32 %v1102_v55 }
 0x573   :  { %1877 = vtanh.f32 %v1106_v27 }
 0x574   :  { %1879 = vtanh.f32 %v1100_v16 }
 0x575   :  { %1881 = vtanh.f32 %v1111_v20 }
 0x57c   :  { %v1876_v18 = vpop.eup %1875 }
 0x57d   :  { %v1878_v0 = vpop.eup %1877  ;;  %v1104_v6 = vmul.f32 0.5, %v1876_v18 }
 0x57e   :  { %v1108_v58 = vmul.f32 0.5, %v1878_v0  ;;  %v1880_v57 = vpop.eup %1879 }
 0x57f   :  { %v1105_v35 = vadd.f32 0.5, %v1104_v6  ;;  %v1882_v51 = vpop.eup %1881 }
 0x580   :  { %v1109_v59 = vadd.f32 0.5, %v1108_v58  ;;  %v1113_v60 = vmul.f32 0.5, %v1882_v51  ;;  %v1934_v51 = vld [vmem:[#allocation14 + $0x4c] ss:$16 sps:$4 sm:$0xff]  }
 0x581   :  { %v1116_v56 = vmul.f32 %v1880_v57, %v1105_v35 }
 0x582   :  { %v1115_v13 = vmul.f32 %v1109_v59, %v2688_v62  ;;  %v1114_v52 = vadd.f32 0.5, %v1113_v60  ;;  %v2747_v62 = vld [vmem:[#allocation14 + $0x24] ss:$16 sps:$4 sm:$0xff]   ;;  %v1935_v60 = vld [vmem:[#allocation14 + $0x48] ss:$16 sps:$4 sm:$0xff]  }
 0x584   :  { %v2736_v33 = vadd.f32 %v1116_v56, %v1115_v13  ;;  %v1931_v56 = vld [vmem:[#allocation14 + $0x8] ss:$16 sps:$4 sm:$0xff]   ;;  %v1932_v13 = vld [vmem:[#allocation14 + $0x2c] ss:$16 sps:$4 sm:$0xff]  }
 0x586   :  { %1883 = vtanh.f32 %v2736_v33 }
 0x590   :  { %v1884_v61 = vpop.eup %1883 }
 0x591   :  { %v2739_v19 = vmul.f32 %v1884_v61, %v1114_v52  ;;  %v1936_v52 = vld [vmem:[#allocation14 + $0x6c] ss:$16 sps:$4 sm:$0xff]   ;;  %v1937_v61 = vld [vmem:[#allocation14 + $0x68] ss:$16 sps:$4 sm:$0xff]  }
 0x593   :  { %v1127_v63 = vpack.c.bf16 %v2739_v19, %v2739_v19 }
 0x595   :  { %1161 = vmatmul.mubr.bf16.vlgmr.msra.gmra.mrb[32].mxu0 %v1127_v63  ;;  %1202 = vmatmul.mubr.bf16.vlgmr.msra.gmra.mrb[40].mxu1 %v1127_v63  ;;  %v1939_v63 = vld [vmem:[#allocation14 + $0x88] ss:$16 sps:$4 sm:$0xff]  }
 0x596   :  { %1241 = vmatpush1.bf16.msra.mxu0 %v2743_v17  ;;  %1282 = vmatpush1.bf16.msra.mxu1 %v2388_v36  ;;  %v2761_v36 = vld [vmem:[#allocation14 + $0x40] ss:$16 sps:$4 sm:$0xff]  }
 0x597   :  { %1242 = vmatprep.subr.bf16.mxu0 %v2747_v62  ;;  %1283 = vmatprep.subr.bf16.mxu1 %v2391_v37  ;;  %v2765_v37 = vld [vmem:[#allocation14 + $0x64] ss:$16 sps:$4 sm:$0xff]  }
 0x598   :  { %1272 = vmatprep.mubr.bf16.mxu0 %v2932_v26  ;;  %1313 = vmatprep.mubr.bf16.mxu1 %v2932_v26 }
 0x59a   :  { %1243 = vmatpush1.bf16.msra.mxu0 %v2753_v5  ;;  %1284 = vmatpush1.bf16.msra.mxu1 %v2398_v38  ;;  %v2773_v38 = vld [vmem:[#allocation14 + $0x84] ss:$16 sps:$4 sm:$0xff]  }
 0x59b   :  { %1244 = vmatprep.subr.bf16.mxu0 %v2757_v8  ;;  %1285 = vmatprep.subr.bf16.mxu1 %v2402_v39  ;;  %v2777_v39 = vld [vmem:[#allocation14 + $0x80] ss:$16 sps:$4 sm:$0xff]  }
 0x59e   :  { %1245 = vmatpush1.bf16.msra.mxu0 %v2761_v36  ;;  %1286 = vmatpush1.bf16.msra.mxu1 %v2407_v40  ;;  %v2781_v40 = vld [vmem:[#allocation14 + $0xa4] ss:$16 sps:$4 sm:$0xff]  }
 0x59f   :  { %1246 = vmatprep.subr.bf16.mxu0 %v2765_v37  ;;  %1287 = vmatprep.subr.bf16.mxu1 %v2410_v41  ;;  %v2785_v41 = vld [vmem:[#allocation14 + $0xa0] ss:$16 sps:$4 sm:$0xff]  }
 0x5a2   :  { %1247 = vmatpush1.bf16.msra.mxu0 %v2769_v9  ;;  %1288 = vmatpush1.bf16.msra.mxu1 %v2417_v42  ;;  %v2789_v42 = vld [vmem:[#allocation14 + $0xc4] ss:$16 sps:$4 sm:$0xff]  }
 0x5a3   :  { %1248 = vmatprep.subr.bf16.mxu0 %v2773_v38  ;;  %1289 = vmatprep.subr.bf16.mxu1 %v2420_v43  ;;  %v2793_v43 = vld [vmem:[#allocation14 + $0xc0] ss:$16 sps:$4 sm:$0xff]  }
 0x5a6   :  { %1249 = vmatpush1.bf16.msra.mxu0 %v2777_v39  ;;  %1290 = vmatpush1.bf16.msra.mxu1 %v2425_v44  ;;  %v2797_v44 = vld [vmem:[#allocation14 + $0xe4] ss:$16 sps:$4 sm:$0xff]  }
 0x5a7   :  { %1250 = vmatprep.subr.bf16.mxu0 %v2781_v40  ;;  %1291 = vmatprep.subr.bf16.mxu1 %v2428_v45  ;;  %v2801_v45 = vld [vmem:[#allocation14 + $0xe0] ss:$16 sps:$4 sm:$0xff]  }
 0x5aa   :  { %1251 = vmatpush1.bf16.msra.mxu0 %v2785_v41  ;;  %1292 = vmatpush1.bf16.msra.mxu1 %v2431_v46 }
 0x5ab   :  { %1252 = vmatprep.subr.bf16.mxu0 %v2789_v42  ;;  %1293 = vmatprep.subr.bf16.mxu1 %v2434_v47 }
 0x5ae   :  { %1253 = vmatpush1.bf16.msra.mxu0 %v2793_v43  ;;  %1294 = vmatpush1.bf16.msra.mxu1 %v2437_v48 }
 0x5af   :  { %1254 = vmatprep.subr.bf16.mxu0 %v2797_v44  ;;  %1295 = vmatprep.subr.bf16.mxu1 %v2440_v49 }
 0x5b2   :  { %1255 = vmatpush1.bf16.msra.mxu0 %v2801_v45  ;;  %1296 = vmatpush1.bf16.msra.mxu1 %v2443_v50 }
 0x5b3   :  { %1352 = vmatprep.subr.bf16.mxu0 %v2727_v7  ;;  %1393 = vmatprep.subr.bf16.mxu1 %v2383_v34 }
 0x668   :  { %v1162_v46 = vpop.f32.mrb[32].mxu0  ;;  %v1203_v47 = vpop.f32.mrb[40].mxu1 }
 0x669   :  { %v1210_v48 = vadd.f32 %v1162_v46, %v2534_v54  ;;  %v1212_v14 = vadd.f32 %v1203_v47, %v2942_v12  ;;  %v1164_v15 = vpop.f32.mrb[33].mxu0  ;;  %v1205_v16 = vpop.f32.mrb[41].mxu1 }
 0x66a   :  { %v1211_v49 = vadd.f32 %v1164_v15, %v2536_v4  ;;  %v1213_v23 = vadd.f32 %v1205_v16, %v2943_v21  ;;  %v1166_v24 = vpop.f32.mrb[34].mxu0  ;;  %v1207_v25 = vpop.f32.mrb[42].mxu1 }
 0x66b   :  { %v1214_v28 = vmul.f32 0.5, %v1210_v48  ;;  %v1167_v50 = vpop.f32.mrb[35].mxu0  ;;  %v1208_v30 = vpop.f32.mrb[43].mxu1  ;;  %v2945_v48 = vld [vmem:[#allocation36_spill] sm:$0xff] }
 0x66c   :  { %v1218_v7 = vmul.f32 0.5, %v1211_v49  ;;  %v1223_v34 = vmul.f32 0.5, %v1213_v23 }
 0x66d   :  { %1885 = vtanh.f32 %v1214_v28 }
 0x66e   :  { %1887 = vtanh.f32 %v1218_v7 }
 0x66f   :  { %1889 = vtanh.f32 %v1212_v14 }
 0x670   :  { %1891 = vtanh.f32 %v1223_v34 }
 0x677   :  { %v1886_v31 = vpop.eup %1885 }
 0x678   :  { %v1888_v54 = vpop.eup %1887  ;;  %v1216_v32 = vmul.f32 0.5, %v1886_v31 }
 0x679   :  { %v1220_v55 = vmul.f32 0.5, %v1888_v54  ;;  %v1890_v2 = vpop.eup %1889 }
 0x67a   :  { %v1217_v10 = vadd.f32 0.5, %v1216_v32  ;;  %v1892_v0 = vpop.eup %1891 }
 0x67b   :  { %v1221_v4 = vadd.f32 0.5, %v1220_v55  ;;  %v1225_v6 = vmul.f32 0.5, %v1892_v0  ;;  %v1831_v0 = vld [vmem:[#allocation15 + $0x20] sm:$0xff]  }
 0x67c   :  { %v1228_v27 = vmul.f32 %v1890_v2, %v1217_v10 }
 0x67d   :  { %v1227_v20 = vmul.f32 %v1221_v4, %v2736_v33  ;;  %v1226_v58 = vadd.f32 0.5, %v1225_v6  ;;  %v1933_v33 = vld [vmem:[#allocation14 + $0x28] ss:$16 sps:$4 sm:$0xff]  }
 0x67e   :  { %v1828_v4 = vld [vmem:[#allocation15 + $0x8] sm:$0xff]  }
 0x67f   :  { %v2812_v18 = vadd.f32 %v1228_v27, %v1227_v20  ;;  %v1468_v27 = vpack.c.bf16 %v2599_v3, %v2553_v1  ;;  %v1829_v20 = vld [vmem:[#allocation15 + $0x10] sm:$0xff]   ;;  %v1832_v6 = vld [vmem:[#allocation15 + $0x28] sm:$0xff]   ;;  %v1834_v1 = vld [vmem:[#allocation15 + $0x38] sm:$0xff]   ;;  %v1469_v3 = vpack.c.bf16 %v2691_v29, %v2645_v53 }
 0x681   :  { %1893 = vtanh.f32 %v2812_v18 }
 0x68b   :  { %v1894_v35 = vpop.eup %1893 }
 0x68c   :  { %v2815_v57 = vmul.f32 %v1894_v35, %v1226_v58  ;;  %v1833_v58 = vld [vmem:[#allocation15 + $0x30] sm:$0xff]  }
 0x68e   :  { %v1239_v59 = vpack.c.bf16 %v2815_v57, %v2815_v57  ;;  %v1470_v35 = vpack.c.bf16 %v2815_v57, %v2739_v19 }
 0x690   :  { %1273 = vmatmul.mubr.bf16.vlgmr.msra.gmra.mrb[36].mxu0 %v1239_v59  ;;  %1314 = vmatmul.mubr.bf16.vlgmr.msra.gmra.mrb[44].mxu1 %v1239_v59 }
 0x691   :  { %1353 = vmatpush1.bf16.msra.mxu0 %v2743_v17  ;;  %1394 = vmatpush1.bf16.msra.mxu1 %v1931_v56  ;;  %v1940_v17 = vld [vmem:[#allocation14 + $0xac] ss:$16 sps:$4 sm:$0xff]  }
 0x692   :  { %1354 = vmatprep.subr.bf16.mxu0 %v2747_v62  ;;  %1395 = vmatprep.subr.bf16.mxu1 %v1932_v13  ;;  %v1941_v62 = vld [vmem:[#allocation14 + $0xa8] ss:$16 sps:$4 sm:$0xff]  }
 0x693   :  { %1384 = vmatprep.mubr.bf16.mxu0 %v2932_v26  ;;  %1425 = vmatprep.mubr.bf16.mxu1 %v2932_v26  ;;  %v1938_v26 = vld [vmem:[#allocation14 + $0x8c] ss:$16 sps:$4 sm:$0xff]  }
 0x694   :  { %v2946_v13 = vld [vmem:[#allocation42_spill] sm:$0xff] }
 0x695   :  { %1355 = vmatpush1.bf16.msra.mxu0 %v2753_v5  ;;  %1396 = vmatpush1.bf16.msra.mxu1 %v1933_v33  ;;  %v1942_v5 = vld [vmem:[#allocation14 + $0xcc] ss:$16 sps:$4 sm:$0xff]  }
 0x696   :  { %1356 = vmatprep.subr.bf16.mxu0 %v2757_v8  ;;  %1397 = vmatprep.subr.bf16.mxu1 %v1934_v51  ;;  %v1943_v8 = vld [vmem:[#allocation14 + $0xc8] ss:$16 sps:$4 sm:$0xff]  }
 0x697   :  { %v2947_v51 = vld [vmem:[#allocation38_spill] sm:$0xff] }
 0x699   :  { %1357 = vmatpush1.bf16.msra.mxu0 %v2761_v36  ;;  %1398 = vmatpush1.bf16.msra.mxu1 %v1935_v60  ;;  %v1944_v36 = vld [vmem:[#allocation14 + $0xec] ss:$16 sps:$4 sm:$0xff]  }
 0x69a   :  { %1358 = vmatprep.subr.bf16.mxu0 %v2765_v37  ;;  %1399 = vmatprep.subr.bf16.mxu1 %v1936_v52  ;;  %v1945_v37 = vld [vmem:[#allocation14 + $0xe8] ss:$16 sps:$4 sm:$0xff]  }
 0x69d   :  { %1359 = vmatpush1.bf16.msra.mxu0 %v2769_v9  ;;  %1400 = vmatpush1.bf16.msra.mxu1 %v1937_v61  ;;  %v1827_v9 = vld [vmem:[#allocation15] sm:$0xff]  }
 0x69e   :  { %1360 = vmatprep.subr.bf16.mxu0 %v2773_v38  ;;  %1401 = vmatprep.subr.bf16.mxu1 %v1938_v26  ;;  %v2948_v26 = vld [vmem:[#allocation43_spill] sm:$0xff] }
 0x6a1   :  { %1361 = vmatpush1.bf16.msra.mxu0 %v2777_v39  ;;  %1402 = vmatpush1.bf16.msra.mxu1 %v1939_v63 }
 0x6a2   :  { %1362 = vmatprep.subr.bf16.mxu0 %v2781_v40  ;;  %1403 = vmatprep.subr.bf16.mxu1 %v1940_v17  ;;  %v2949_v17 = vld [vmem:[#allocation39_spill] sm:$0xff] }
 0x6a5   :  { %1363 = vmatpush1.bf16.msra.mxu0 %v2785_v41  ;;  %1404 = vmatpush1.bf16.msra.mxu1 %v1941_v62  ;;  %v2944_v41 = vld [vmem:[#allocation34_spill] sm:$0xff] }
 0x6a6   :  { %1364 = vmatprep.subr.bf16.mxu0 %v2789_v42  ;;  %1405 = vmatprep.subr.bf16.mxu1 %v1942_v5 }
 0x6a9   :  { %1365 = vmatpush1.bf16.msra.mxu0 %v2793_v43  ;;  %1406 = vmatpush1.bf16.msra.mxu1 %v1943_v8 }
 0x6aa   :  { %1366 = vmatprep.subr.bf16.mxu0 %v2797_v44  ;;  %1407 = vmatprep.subr.bf16.mxu1 %v1944_v36 }
 0x6ad   :  { %1367 = vmatpush1.bf16.msra.mxu0 %v2801_v45  ;;  %1408 = vmatpush1.bf16.msra.mxu1 %v1945_v37 }
 0x6ae   :  { %1733 = vmatprep.subr.bf16.mxu0 %v1827_v9 }
 0x763   :  { %v1274_v38 = vpop.f32.mrb[36].mxu0  ;;  %v1315_v39 = vpop.f32.mrb[44].mxu1 }
 0x764   :  { %v1322_v40 = vadd.f32 %v1274_v38, %v2538_v22  ;;  %v1324_v42 = vadd.f32 %v1315_v39, %v2944_v41  ;;  %v1276_v46 = vpop.f32.mrb[37].mxu0  ;;  %v1317_v43 = vpop.f32.mrb[45].mxu1 }
 0x765   :  { %v1323_v47 = vadd.f32 %v1276_v46, %v2540_v11  ;;  %v1325_v44 = vadd.f32 %v1317_v43, %v2945_v48  ;;  %v1278_v12 = vpop.f32.mrb[38].mxu0  ;;  %v1319_v14 = vpop.f32.mrb[46].mxu1 }
 0x766   :  { %v1326_v15 = vmul.f32 0.5, %v1322_v40  ;;  %v1279_v45 = vpop.f32.mrb[39].mxu0  ;;  %v1320_v16 = vpop.f32.mrb[47].mxu1  ;;  %v1712_v12 = vld [vmem:[%s2909_s7] ss:$0 sm:$0xff]  ;;  %s2169_s7 = smov [#allocation18]  }
 0x767   :  { %v1330_v49 = vmul.f32 0.5, %v1323_v47  ;;  %v1335_v21 = vmul.f32 0.5, %v1325_v44  ;;  %s1639_s29 = sshll.u32 %s2169_s7, 4  ;;  %s1640_s29 = int_to_ptr.vmem [resolvable:$true] %s1639_s29 }
 0x768   :  { %1895 = vtanh.f32 %v1326_v15  ;;  %s2078_s30 = scalar_lea.vmem %s1640_s29, 128  ;;  %p2083_p7 = scmp.lt.s32.totalorder %s1640_s29, %s1640_s29 }
 0x769   :  { %1897 = vtanh.f32 %v1330_v49  ;;  %p2079_p6 = scmp.ne.s32.totalorder %s1640_s29, %s2078_s30  ;;  %p2084_p8 = scmp.lt.s32.totalorder %s2078_s30, %s2078_s30 }
 0x76a   :  { %1899 = vtanh.f32 %v1324_v42 }
 0x76b   :  { %1901 = vtanh.f32 %v1335_v21  ;;  %p2085_p9 = por %p2084_p8, %p2083_p7 }
 0x76d   :  { %p2086_p10 = pnand %p2085_p9, %p2079_p6 }
 0x772   :  { %v1896_v23 = vpop.eup %1895 }
 0x773   :  { %v1898_v22 = vpop.eup %1897  ;;  %v1328_v24 = vmul.f32 0.5, %v1896_v23 }
 0x774   :  { %v1332_v25 = vmul.f32 0.5, %v1898_v22  ;;  %v1900_v50 = vpop.eup %1899 }
 0x775   :  { %v1329_v28 = vadd.f32 0.5, %v1328_v24  ;;  %v1902_v31 = vpop.eup %1901 }
 0x776   :  { %v1333_v11 = vadd.f32 0.5, %v1332_v25  ;;  %v1337_v54 = vmul.f32 0.5, %v1902_v31 }
 0x777   :  { %v1340_v30 = vmul.f32 %v1900_v50, %v1329_v28 }
 0x778   :  { %v1339_v7 = vmul.f32 %v1333_v11, %v2812_v18  ;;  %v1338_v32 = vadd.f32 0.5, %v1337_v54  ;;  %v1830_v18 = vld [vmem:[#allocation15 + $0x18] sm:$0xff]  }
 0x77a   :  { %v2841_v34 = vadd.f32 %v1340_v30, %v1339_v7 }
 0x77c   :  { %1903 = vtanh.f32 %v2841_v34 }
 0x786   :  { %v1904_v55 = vpop.eup %1903 }
 0x787   :  { %v2844_v10 = vmul.f32 %v1904_v55, %v1338_v32 }
 0x789   :  { %v1351_v2 = vpack.c.bf16 %v2844_v10, %v2844_v10 }
 0x78b   :  { %1385 = vmatmul.mubr.bf16.vlgmr.msra.gmra.mrb[40].mxu0 %v1351_v2  ;;  %1426 = vmatmul.mubr.bf16.vlgmr.msra.gmra.mrb[48].mxu1 %v1351_v2 }
 0x78c   :  { %1734 = vmatpush3.bf16.msra.mxu0 %v1827_v9  ;;  %1749 = vmatprep.mubr.bf16.mxu0 %v1468_v27 }
 0x78d   :  { %1735 = vmatprep.subr.bf16.mxu0 %v1828_v4 }
 0x790   :  { %1736 = vmatpush3.bf16.msra.mxu0 %v1828_v4 }
 0x791   :  { %1737 = vmatprep.subr.bf16.mxu0 %v1829_v20 }
 0x794   :  { %1738 = vmatpush3.bf16.msra.mxu0 %v1829_v20 }
 0x795   :  { %1739 = vmatprep.subr.bf16.mxu0 %v1830_v18 }
 0x798   :  { %1740 = vmatpush3.bf16.msra.mxu0 %v1830_v18 }
 0x799   :  { %1741 = vmatprep.subr.bf16.mxu0 %v1831_v0 }
 0x79c   :  { %1742 = vmatpush3.bf16.msra.mxu0 %v1831_v0 }
 0x79d   :  { %1743 = vmatprep.subr.bf16.mxu0 %v1832_v6 }
 0x7a0   :  { %1744 = vmatpush3.bf16.msra.mxu0 %v1832_v6 }
 0x7a1   :  { %1745 = vmatprep.subr.bf16.mxu0 %v1833_v58 }
 0x7a4   :  { %1746 = vmatpush3.bf16.msra.mxu0 %v1833_v58 }
 0x7a5   :  { %1747 = vmatprep.subr.bf16.mxu0 %v1834_v1 }
 0x7a8   :  { %1748 = vmatpush3.bf16.msra.mxu0 %v1834_v1 }
 0x7ab   :  { %1750 = vmatmul.mubr.bf16.vlgmr.msra.gmra.mrb[44].mxu0 %v1469_v3 }
 0x7ac   :  { %1753 = vmatprep.mubr.bf16.mxu0 %v1470_v35 }
 0x85e   :  { %v1386_v59 = vpop.f32.mrb[40].mxu0  ;;  %v1427_v56 = vpop.f32.mrb[48].mxu1 }
 0x85f   :  { %v1434_v33 = vadd.f32 %v1386_v59, %v2946_v13  ;;  %v1436_v60 = vadd.f32 %v1427_v56, %v2947_v51  ;;  %v1388_v52 = vpop.f32.mrb[41].mxu0  ;;  %v1429_v61 = vpop.f32.mrb[49].mxu1 }
 0x860   :  { %v1435_v63 = vadd.f32 %v1388_v52, %v2948_v26  ;;  %v1437_v62 = vadd.f32 %v1429_v61, %v2949_v17  ;;  %v1390_v5 = vpop.f32.mrb[42].mxu0  ;;  %v1431_v8 = vpop.f32.mrb[50].mxu1 }
 0x861   :  { %v1438_v53 = vmul.f32 0.5, %v1434_v33  ;;  %v1391_v29 = vpop.f32.mrb[43].mxu0  ;;  %v1432_v36 = vpop.f32.mrb[51].mxu1 }
 0x862   :  { %v1442_v19 = vmul.f32 0.5, %v1435_v63  ;;  %v1447_v57 = vmul.f32 0.5, %v1437_v62 }
 0x863   :  { %1905 = vtanh.f32 %v1438_v53 }
 0x864   :  { %1907 = vtanh.f32 %v1442_v19 }
 0x865   :  { %1909 = vtanh.f32 %v1436_v60 }
 0x866   :  { %1911 = vtanh.f32 %v1447_v57 }
 0x86d   :  { %v1906_v37 = vpop.eup %1905 }
 0x86e   :  { %v1908_v9 = vpop.eup %1907  ;;  %v1440_v38 = vmul.f32 0.5, %v1906_v37 }
 0x86f   :  { %v1444_v39 = vmul.f32 0.5, %v1908_v9  ;;  %v1910_v41 = vpop.eup %1909 }
 0x870   :  { %v1441_v40 = vadd.f32 0.5, %v1440_v38  ;;  %v1912_v48 = vpop.eup %1911 }
 0x871   :  { %v1445_v42 = vadd.f32 0.5, %v1444_v39  ;;  %v1449_v44 = vmul.f32 0.5, %v1912_v48 }
 0x872   :  { %v1452_v46 = vmul.f32 %v1910_v41, %v1441_v40 }
 0x873   :  { %v1451_v43 = vmul.f32 %v1445_v42, %v2841_v34  ;;  %v1450_v16 = vadd.f32 0.5, %v1449_v44 }
 0x875   :  { %v1453_v47 = vadd.f32 %v1452_v46, %v1451_v43 }
 0x877   :  { %1913 = vtanh.f32 %v1453_v47  ;;  %1620 = vst [vmem:[#allocation20] sm:$0xff] %v1453_v47 }
 0x87e   :  { %v1751_v14 = vpop.f32.mrb[44].mxu0 }
 0x87f   :  { %v1586_v15 = vadd.f32 %v1751_v14, %v1712_v12  ;;  %v1577_v45 = vpop.f32.mrb[45].mxu0 }
 0x880   :  { %v1578_v49 = vadd.f32 %v1712_v12, %v1577_v45  ;;  %v1752_v21 = vpop.f32.mrb[46].mxu0 }
 0x881   :  { %v1914_v23 = vpop.eup %1913  ;;  %1610 = vst [vmem:[#allocation17 + $0x10] sm:$0xff] %v1586_v15  ;;  %v1589_v22 = vadd.f32 %v1752_v21, %v1712_v12  ;;  %v1580_v24 = vpop.f32.mrb[47].mxu0 }
 0x882   :  { %1608 = vst [vmem:[#allocation17] sm:$0xff] %v1578_v49  ;;  %v1581_v25 = vadd.f32 %v1712_v12, %v1580_v24  ;;  %v1455_v28 = vmul.f32 %v1914_v23, %v1450_v16 }
 0x883   :  { %1611 = vst [vmem:[#allocation17 + $0x18] sm:$0xff] %v1589_v22 }
 0x884   :  { %1609 = vst [vmem:[#allocation17 + $0x8] sm:$0xff] %v1581_v25  ;;  %v1471_v50 = vpack.c.bf16 %v1455_v28, %v2844_v10  ;;  %1619 = vst [vmem:[#allocation18] sm:$0xff] %v1455_v28 }
 0x886   :  { %1754 = vmatmul.mubr.bf16.gmra.mrb[48].mxu0 %v1471_v50 }
 0x887   :  { %2089 = shalt.err (!%p2086_p10)
}
 0x888   :  { %s2090_s17 = scalar_lea.hbm %s2911_s9, 128 }
 0x889   :  { %p2091_p11 = scmp.ne.s32.totalorder %s2911_s9, %s2090_s17  ;;  %p2094_p12 = scmp.lt.u32.totalorder %s2090_s17, %s2911_s9 }
 0x88b   :  { %p2096_p13 = pnand %p2094_p12, %p2091_p11 }
 0x88d   :  { %2099 = shalt.err (!%p2096_p13)
}
 0x88e   :  { %1642 = dma.vmem_to_hbm [thread:$0]  %s1640_s29, 128, %s2911_s9, [#allocation19]  }
 0x88f   :  { %s2170_s23 = smov [#allocation20]  }
 0x890   :  { %s1649_s24 = sshll.u32 %s2170_s23, 4  ;;  %s1650_s24 = int_to_ptr.vmem [resolvable:$true] %s1649_s24 }
 0x891   :  { %s2100_s0 = scalar_lea.vmem %s1650_s24, 128  ;;  %p2105_p1 = scmp.lt.s32.totalorder %s1650_s24, %s1650_s24 }
 0x892   :  { %p2101_p0 = scmp.ne.s32.totalorder %s1650_s24, %s2100_s0  ;;  %p2106_p2 = scmp.lt.s32.totalorder %s2100_s0, %s2100_s0 }
 0x894   :  { %p2107_p3 = por %p2106_p2, %p2105_p1 }
 0x896   :  { %p2108_p4 = pnand %p2107_p3, %p2101_p0 }
 0x898   :  { %2111 = shalt.err (!%p2108_p4)
}
 0x899   :  { %s2112_s26 = scalar_lea.hbm %s2912_s10, 128 }
 0x89a   :  { %p2113_p5 = scmp.ne.s32.totalorder %s2912_s10, %s2112_s26  ;;  %p2116_p6 = scmp.lt.u32.totalorder %s2112_s26, %s2912_s10 }
 0x89c   :  { %p2118_p7 = pnand %p2116_p6, %p2113_p5 }
 0x89e   :  { %2121 = shalt.err (!%p2118_p7)
}
 0x89f   :  { %1652 = dma.vmem_to_hbm [thread:$0]  %s1650_s24, 128, %s2912_s10, [#allocation19]  }
 0x8a0   :  { %s2171_s27 = smov [#allocation17]  }
 0x8a1   :  { %s1626_s5 = sshll.u32 %s2171_s27, 4  ;;  %s1627_s5 = int_to_ptr.vmem [resolvable:$true] %s1626_s5 }
 0x8a2   :  { %s2122_s28 = scalar_lea.vmem %s1627_s5, 1024  ;;  %p2127_p9 = scmp.lt.s32.totalorder %s1627_s5, %s1627_s5 }
 0x8a3   :  { %p2123_p8 = scmp.ne.s32.totalorder %s1627_s5, %s2122_s28  ;;  %p2128_p10 = scmp.lt.s32.totalorder %s2122_s28, %s2122_s28 }
 0x8a5   :  { %p2129_p11 = por %p2128_p10, %p2127_p9 }
 0x8a7   :  { %p2130_p12 = pnand %p2129_p11, %p2123_p8 }
 0x959   :  { %v1755_v11 = vpop.f32.mrb[48].mxu0 }
 0x95a   :  { %v1602_v30 = vadd.f32 %v1755_v11, %v1712_v12  ;;  %v1593_v7 = vpop.f32.mrb[49].mxu0 }
 0x95b   :  { %v1594_v34 = vadd.f32 %v1712_v12, %v1593_v7  ;;  %v1756_v31 = vpop.f32.mrb[50].mxu0 }
 0x95c   :  { %1614 = vst [vmem:[#allocation17 + $0x30] sm:$0xff] %v1602_v30  ;;  %v1605_v54 = vadd.f32 %v1756_v31, %v1712_v12  ;;  %v1596_v32 = vpop.f32.mrb[51].mxu0 }
 0x95d   :  { %1612 = vst [vmem:[#allocation17 + $0x20] sm:$0xff] %v1594_v34  ;;  %v1597_v55 = vadd.f32 %v1712_v12, %v1596_v32 }
 0x95e   :  { %1615 = vst [vmem:[#allocation17 + $0x38] sm:$0xff] %v1605_v54 }
 0x95f   :  { %1613 = vst [vmem:[#allocation17 + $0x28] sm:$0xff] %v1597_v55 }
 0x960   :  { %2133 = shalt.err (!%p2130_p12)
}
 0x961   :  { %s2134_s29 = scalar_lea.hbm %s2910_s8, 1024 }
 0x962   :  { %p2135_p13 = scmp.ne.s32.totalorder %s2910_s8, %s2134_s29  ;;  %p2138_p0 = scmp.lt.u32.totalorder %s2134_s29, %s2910_s8 }
 0x964   :  { %p2140_p1 = pnand %p2138_p0, %p2135_p13 }
 0x966   :  { %2143 = shalt.err (!%p2140_p1)
}
 0x967   :  { %1632 = dma.vmem_to_hbm [thread:$0]  %s1627_s5, 1024, %s2910_s8, [#allocation8], %s2161_s3, %s2161_s3, %s2162_s16  }
 0x968   :  { %2152 = dma.done.wait [#allocation8], 1024  }
 0x969   :  { %2153 = vsyncadd [#allocation8], 4294966272 }
 0x96a   :  { %2154 = dma.done.wait [#allocation19], 256  }
 0x96b   :  { %2155 = vsyncadd [#allocation19], 4294967040 }
 0x96c   :  { %1662 = vsyncpa [#allocation7], 1 }
 0x96d   :  { %1663 = vsyncpa [#allocation10], 1 }
 0x96e   :  { %1664 = vsyncpa [#allocation13], 1 }
 0x96f   :  { %1665 = vsyncpa [#allocation16], 1 }
 0x970   :  { %1666 = vsyncpa [#allocation8], 1 }
 0x971   :  { %1667 = vsyncpa [#allocation19], 1 }

</bundles_post_ra>
